<compile_context>
chip_gen: v7x
topology: tpu7x:2x2x1
jax: 0.10.0
libtpu: 0.0.40
codegen_flags: <defaults>
</compile_context>

<pallas_src>
import functools

import jax
import jax.numpy as jnp
from jax import lax
from jax.experimental import pallas as pl
from jax.experimental.pallas import tpu as pltpu


def _dilconv_kernel(wdw_ref, wpw_ref, b_ref, x_ref, o_ref, xpad_ref, dw_ref, *,
                    k, dil, stride, pad, h, w, h1, w1, h_out, w_out, c_in, c_out):
    """Fused ReLU -> depthwise dilated KxK conv (stride folded) -> MXU 1x1 conv + BN.

    wdw_ref  : (k*k, 1, c_in)    depthwise weights, one channel-row per tap   (VMEM)
    wpw_ref  : (c_in, c_out)     1x1 weights with BN scale folded in          (VMEM)
    b_ref    : (1, c_out)        folded BN bias                               (VMEM)
    x_ref    : (1, h, w, c_in)   one input image, channels-last               (VMEM)
    o_ref    : (1, h_out*w_out, c_out)  lane-dense flattened-spatial output   (VMEM)
    xpad_ref : (h+2p, w+2p, c_in) scratch: zero-padded ReLU'd image           (VMEM)
    dw_ref   : (h_out, w_out, c_in) scratch: depthwise output (strided path)  (VMEM)
    """
    # 1) ReLU + zero-pad into the VMEM scratch (relu(0) == 0, so padding-before-ReLU
    #    is exact; the zero border is rewritten as zero every grid step).
    xpad_ref[...] = jnp.zeros_like(xpad_ref)
    xpad_ref[pad:pad + h, pad:pad + w, :] = jnp.maximum(
        x_ref[0].astype(jnp.float32), 0.0)

    # 2) Depthwise dilated KxK conv: k*k shifted-window FMAs, channels in lanes.
    if stride == 1:
        acc = jnp.zeros((h1, w1, c_in), jnp.float32)
        for kh in range(k):
            for kw in range(k):
                win = xpad_ref[kh * dil:kh * dil + h1, kw * dil:kw * dil + w1, :]
                acc = acc + win * wdw_ref[kh * k + kw]          # (1,c_in) broadcast
        dw2 = acc.reshape(h1 * w1, c_in)                        # (P, C_in)
    else:
        # Stride folded in-kernel: compute only kept output rows (fori_loop over
        # h_out rows), and subsample kept columns with a 0/1 selection matrix on
        # the MXU (avoids strided vector slices entirely).
        sel = (lax.broadcasted_iota(jnp.int32, (w_out, w1), 1)
               == stride * lax.broadcasted_iota(jnp.int32, (w_out, w1), 0)
               ).astype(jnp.float32)                            # (w_out, w1)

        def row_body(i, carry):
            acc_row = jnp.zeros((w1, c_in), jnp.float32)
            for kh in range(k):
                r = i * stride + kh * dil                       # kept input row
                for kw in range(k):
                    acc_row = acc_row + (
                        xpad_ref[r, pl.ds(kw * dil, w1), :] * wdw_ref[kh * k + kw])
            dw_ref[i] = jnp.dot(sel, acc_row,
                                preferred_element_type=jnp.float32)   # (w_out, c_in)
            return carry

        lax.fori_loop(0, h_out, row_body, jnp.int32(0))
        dw2 = dw_ref[...].reshape(h_out * w_out, c_in)          # (P, C_in)

    # 3) Pointwise 1x1 conv + folded BatchNorm: one MXU matmul + bias-row add.
    y = jnp.dot(dw2, wpw_ref[...], preferred_element_type=jnp.float32) + b_ref[...]
    o_ref[0] = y.astype(o_ref.dtype)                            # lane-dense store


@functools.partial(jax.jit,
                   static_argnames=("stride", "padding", "dilation", "eps"))
def dil_conv(x, w_dw, w_pw, gamma, beta, running_mean, running_var, *,
             stride=1, padding=2, dilation=2, eps=1e-5):
    """Pallas equivalent of DilConv.forward(x).  x is NCHW (PyTorch layout).

    w_dw : (C_in, 1, K, K)     depthwise conv weight (groups=C_in)
    w_pw : (C_out, C_in, 1, 1) pointwise conv weight
    gamma/beta/running_mean/running_var : (C_out,) BatchNorm params (inference).
    """
    n, c_in, h, w = x.shape
    c_out = w_pw.shape[0]
    k = w_dw.shape[-1]

    # Fold BatchNorm (running stats) into the 1x1 conv: y = dw @ Wf + bias.
    scale = gamma / jnp.sqrt(running_var + eps)                           # (c_out,)
    wpw_folded = (w_pw[:, :, 0, 0] * scale[:, None]).T.astype(jnp.float32)  # (c_in,c_out)
    bias_folded = (beta - running_mean * scale).reshape(1, c_out).astype(jnp.float32)
    # Depthwise weights as (k*k, 1, c_in): one channel-row per tap, lanes = channels.
    wdw = (w_dw[:, 0, :, :].transpose(1, 2, 0)          # (K, K, C_in)
           .reshape(k * k, c_in)[:, None, :]            # (K*K, 1, C_in)
           .astype(jnp.float32))

    hp, wp = h + 2 * padding, w + 2 * padding
    h1 = hp - dilation * (k - 1)            # stride-1 output spatial size
    w1 = wp - dilation * (k - 1)
    h_out = (h1 - 1) // stride + 1          # == PyTorch strided-conv output size
    w_out = (w1 - 1) // stride + 1
    p_out = h_out * w_out

    # Channels-last for the kernel (lane dim = channels, spatial in sublanes).
    x_nhwc = jnp.transpose(x, (0, 2, 3, 1))

    kernel = functools.partial(
        _dilconv_kernel, k=k, dil=dilation, stride=stride, pad=padding,
        h=h, w=w, h1=h1, w1=w1, h_out=h_out, w_out=w_out, c_in=c_in, c_out=c_out)

    y_flat = pl.pallas_call(
        kernel,
        out_shape=jax.ShapeDtypeStruct((n, p_out, c_out), x.dtype),
        grid=(n,),
        in_specs=[
            pl.BlockSpec((k * k, 1, c_in), lambda i: (0, 0, 0)),     # depthwise w
            pl.BlockSpec((c_in, c_out), lambda i: (0, 0)),           # folded 1x1 w
            pl.BlockSpec((1, c_out), lambda i: (0, 0)),              # folded bias
            pl.BlockSpec((1, h, w, c_in), lambda i: (i, 0, 0, 0)),   # image i (NHWC)
        ],
        out_specs=pl.BlockSpec((1, p_out, c_out), lambda i: (i, 0, 0)),
        scratch_shapes=[
            pltpu.VMEM((hp, wp, c_in), jnp.float32),          # padded ReLU image
            pltpu.VMEM((h_out, w_out, c_in), jnp.float32),    # depthwise out (strided)
        ],
        compiler_params=pltpu.CompilerParams(
            dimension_semantics=("parallel",),
            vmem_limit_bytes=32 * 1024 * 1024),
    )(wdw, wpw_folded, bias_folded, x_nhwc)

    # (N, H*W, C_out) -> NCHW to match the PyTorch module's output layout.
    return y_flat.reshape(n, h_out, w_out, c_out).transpose(0, 3, 1, 2)


def dil_conv_ref(x, w_dw, w_pw, gamma, beta, running_mean, running_var, *,
                 stride, padding, dilation, eps=1e-5):
    """Pure-JAX reference (lax convs) for validation."""
    c_in = x.shape[1]
    xr = jnp.maximum(x, 0.0)
    dw = jax.lax.conv_general_dilated(
        xr, w_dw,
        window_strides=(stride, stride),
        padding=((padding, padding), (padding, padding)),
        rhs_dilation=(dilation, dilation),
        dimension_numbers=("NCHW", "OIHW", "NCHW"),
        feature_group_count=c_in,
        precision=jax.lax.Precision.HIGHEST)
    pw = jax.lax.conv_general_dilated(
        dw, w_pw,
        window_strides=(1, 1), padding="VALID",
        dimension_numbers=("NCHW", "OIHW", "NCHW"),
        precision=jax.lax.Precision.HIGHEST)
    s = gamma / jnp.sqrt(running_var + eps)
    return pw * s[None, :, None, None] + (beta - running_mean * s)[None, :, None, None]


if __name__ == "__main__":
    key = jax.random.PRNGKey(0)
    ks = jax.random.split(key, 7)

    # NAS-Bench-201-like small config: dil_conv_3x3, C_in=16 -> C_out=32, 16x16 maps.
    N, C_in, H, W = 2, 16, 16, 16
    C_out, K, padding, dilation = 32, 3, 2, 2

    x = jax.random.normal(ks[0], (N, C_in, H, W), jnp.float32)
    w_dw = 0.3 * jax.random.normal(ks[1], (C_in, 1, K, K), jnp.float32)
    w_pw = 0.3 * jax.random.normal(ks[2], (C_out, C_in, 1, 1), jnp.float32)
    gamma = 1.0 + 0.1 * jax.random.normal(ks[3], (C_out,), jnp.float32)
    beta = 0.1 * jax.random.normal(ks[4], (C_out,), jnp.float32)
    running_mean = 0.1 * jax.random.normal(ks[5], (C_out,), jnp.float32)
    running_var = jax.random.uniform(ks[6], (C_out,), jnp.float32, 0.5, 1.5)

    for stride in (1, 2):
        y = jax.block_until_ready(
            dil_conv(x, w_dw, w_pw, gamma, beta, running_mean, running_var,
                     stride=stride, padding=padding, dilation=dilation))
        y_ref = dil_conv_ref(x, w_dw, w_pw, gamma, beta, running_mean,
                             running_var, stride=stride, padding=padding,
                             dilation=dilation)
        assert y.shape == y_ref.shape, (y.shape, y_ref.shape)
        assert y.dtype == x.dtype
        err = float(jnp.max(jnp.abs(y - y_ref)))
        # MXU matmul (f32 accumulation) vs Precision.HIGHEST XLA conv reference.
        assert err < 1e-3, err

    print("KERNEL_OK")
</pallas_src>

<mosaic_0001>
module attributes {stable_mosaic.version = 11 : i64} {
  func.func @_dilconv_kernel(%arg0: i32, %arg1: memref<9x1x16xf32, #tpu.memory_space<vmem>>, %arg2: memref<16x32xf32, #tpu.memory_space<vmem>>, %arg3: memref<1x32xf32, #tpu.memory_space<vmem>>, %arg4: memref<1x16x16x16xf32, #tpu.memory_space<vmem>>, %arg5: memref<1x256x32xf32, #tpu.memory_space<vmem>>, %arg6: memref<20x20x16xf32, #tpu.memory_space<vmem>>, %arg7: memref<16x16x16xf32, #tpu.memory_space<vmem>>) attributes {dimension_semantics = [#tpu.dimension_semantics<parallel>], iteration_bounds = array<i64: 2>, scalar_prefetch = 0 : i64, scratch_operands = 2 : i64, tpu.core_type = #tpu.core_type<tc>, window_params = [{pipeline_mode = #tpu.pipeline_mode<synchronous>, transform_indices = @transform_0, window_bounds = array<i64: 9, 1, 16>}, {pipeline_mode = #tpu.pipeline_mode<synchronous>, transform_indices = @transform_1, window_bounds = array<i64: 16, 32>}, {pipeline_mode = #tpu.pipeline_mode<synchronous>, transform_indices = @transform_2, window_bounds = array<i64: 1, 32>}, {transform_indices = @transform_3, window_bounds = array<i64: 1, 16, 16, 16>}, {transform_indices = @transform_4, window_bounds = array<i64: 1, 256, 32>}]} {
    %cst = arith.constant 0.000000e+00 : f32
    %0 = vector.broadcast %cst : f32 to vector<20x20x16xf32>
    %c0 = arith.constant 0 : index
    %c0_0 = arith.constant 0 : index
    %c0_1 = arith.constant 0 : index
    %1 = vector.load %arg6[%c0, %c0_0, %c0_1] : memref<20x20x16xf32, #tpu.memory_space<vmem>>, vector<20x20x16xf32>
    tpu.vector_store %arg6[%c0, %c0_0, %c0_1], %0 {strides = array<i32>} : memref<20x20x16xf32, #tpu.memory_space<vmem>>, vector<20x20x16xf32>,
    %c0_2 = arith.constant 0 : index
    %c0_3 = arith.constant 0 : index
    %c0_4 = arith.constant 0 : index
    %c0_5 = arith.constant 0 : index
    %2 = vector.load %arg4[%c0_2, %c0_3, %c0_4, %c0_5] : memref<1x16x16x16xf32, #tpu.memory_space<vmem>>, vector<1x16x16x16xf32>
    %3 = vector.shape_cast %2 : vector<1x16x16x16xf32> to vector<16x16x16xf32>
    %cst_6 = arith.constant 0.000000e+00 : f32
    %4 = vector.broadcast %cst_6 : f32 to vector<16x16x16xf32>
    %5 = arith.maximumf %3, %4 : vector<16x16x16xf32>
    %c2 = arith.constant 2 : index
    %c2_7 = arith.constant 2 : index
    %c0_8 = arith.constant 0 : index
    %6 = vector.load %arg6[%c2, %c2_7, %c0_8] : memref<20x20x16xf32, #tpu.memory_space<vmem>>, vector<16x16x16xf32>
    tpu.vector_store %arg6[%c2, %c2_7, %c0_8], %5 {strides = array<i32>} : memref<20x20x16xf32, #tpu.memory_space<vmem>>, vector<16x16x16xf32>,
    %cst_9 = arith.constant 0.000000e+00 : f32
    %7 = vector.broadcast %cst_9 : f32 to vector<16x16x16xf32>
    %c0_10 = arith.constant 0 : index
    %c0_11 = arith.constant 0 : index
    %c0_12 = arith.constant 0 : index
    %8 = vector.load %arg6[%c0_10, %c0_11, %c0_12] : memref<20x20x16xf32, #tpu.memory_space<vmem>>, vector<16x16x16xf32>
    %c0_13 = arith.constant 0 : index
    %c0_14 = arith.constant 0 : index
    %c0_15 = arith.constant 0 : index
    %9 = vector.load %arg1[%c0_13, %c0_14, %c0_15] : memref<9x1x16xf32, #tpu.memory_space<vmem>>, vector<1x1x16xf32>
    %10 = vector.shape_cast %9 : vector<1x1x16xf32> to vector<1x16xf32>
    %11 = vector.shape_cast %10 : vector<1x16xf32> to vector<1x1x16xf32>
    %12 = vector.broadcast %11 : vector<1x1x16xf32> to vector<16x16x16xf32>
    %13 = arith.mulf %8, %12 : vector<16x16x16xf32>
    %14 = arith.addf %7, %13 : vector<16x16x16xf32>
    %c0_16 = arith.constant 0 : index
    %c2_17 = arith.constant 2 : index
    %c0_18 = arith.constant 0 : index
    %15 = vector.load %arg6[%c0_16, %c2_17, %c0_18] : memref<20x20x16xf32, #tpu.memory_space<vmem>>, vector<16x16x16xf32>
    %c1 = arith.constant 1 : index
    %c0_19 = arith.constant 0 : index
    %c0_20 = arith.constant 0 : index
    %16 = vector.load %arg1[%c1, %c0_19, %c0_20] : memref<9x1x16xf32, #tpu.memory_space<vmem>>, vector<1x1x16xf32>
    %17 = vector.shape_cast %16 : vector<1x1x16xf32> to vector<1x16xf32>
    %18 = vector.shape_cast %17 : vector<1x16xf32> to vector<1x1x16xf32>
    %19 = vector.broadcast %18 : vector<1x1x16xf32> to vector<16x16x16xf32>
    %20 = arith.mulf %15, %19 : vector<16x16x16xf32>
    %21 = arith.addf %14, %20 : vector<16x16x16xf32>
    %c0_21 = arith.constant 0 : index
    %c4 = arith.constant 4 : index
    %c0_22 = arith.constant 0 : index
    %22 = vector.load %arg6[%c0_21, %c4, %c0_22] : memref<20x20x16xf32, #tpu.memory_space<vmem>>, vector<16x16x16xf32>
    %c2_23 = arith.constant 2 : index
    %c0_24 = arith.constant 0 : index
    %c0_25 = arith.constant 0 : index
    %23 = vector.load %arg1[%c2_23, %c0_24, %c0_25] : memref<9x1x16xf32, #tpu.memory_space<vmem>>, vector<1x1x16xf32>
    %24 = vector.shape_cast %23 : vector<1x1x16xf32> to vector<1x16xf32>
    %25 = vector.shape_cast %24 : vector<1x16xf32> to vector<1x1x16xf32>
    %26 = vector.broadcast %25 : vector<1x1x16xf32> to vector<16x16x16xf32>
    %27 = arith.mulf %22, %26 : vector<16x16x16xf32>
    %28 = arith.addf %21, %27 : vector<16x16x16xf32>
    %c2_26 = arith.constant 2 : index
    %c0_27 = arith.constant 0 : index
    %c0_28 = arith.constant 0 : index
    %29 = vector.load %arg6[%c2_26, %c0_27, %c0_28] : memref<20x20x16xf32, #tpu.memory_space<vmem>>, vector<16x16x16xf32>
    %c3 = arith.constant 3 : index
    %c0_29 = arith.constant 0 : index
    %c0_30 = arith.constant 0 : index
    %30 = vector.load %arg1[%c3, %c0_29, %c0_30] : memref<9x1x16xf32, #tpu.memory_space<vmem>>, vector<1x1x16xf32>
    %31 = vector.shape_cast %30 : vector<1x1x16xf32> to vector<1x16xf32>
    %32 = vector.shape_cast %31 : vector<1x16xf32> to vector<1x1x16xf32>
    %33 = vector.broadcast %32 : vector<1x1x16xf32> to vector<16x16x16xf32>
    %34 = arith.mulf %29, %33 : vector<16x16x16xf32>
    %35 = arith.addf %28, %34 : vector<16x16x16xf32>
    %c2_31 = arith.constant 2 : index
    %c2_32 = arith.constant 2 : index
    %c0_33 = arith.constant 0 : index
    %36 = vector.load %arg6[%c2_31, %c2_32, %c0_33] : memref<20x20x16xf32, #tpu.memory_space<vmem>>, vector<16x16x16xf32>
    %c4_34 = arith.constant 4 : index
    %c0_35 = arith.constant 0 : index
    %c0_36 = arith.constant 0 : index
    %37 = vector.load %arg1[%c4_34, %c0_35, %c0_36] : memref<9x1x16xf32, #tpu.memory_space<vmem>>, vector<1x1x16xf32>
    %38 = vector.shape_cast %37 : vector<1x1x16xf32> to vector<1x16xf32>
    %39 = vector.shape_cast %38 : vector<1x16xf32> to vector<1x1x16xf32>
    %40 = vector.broadcast %39 : vector<1x1x16xf32> to vector<16x16x16xf32>
    %41 = arith.mulf %36, %40 : vector<16x16x16xf32>
    %42 = arith.addf %35, %41 : vector<16x16x16xf32>
    %c2_37 = arith.constant 2 : index
    %c4_38 = arith.constant 4 : index
    %c0_39 = arith.constant 0 : index
    %43 = vector.load %arg6[%c2_37, %c4_38, %c0_39] : memref<20x20x16xf32, #tpu.memory_space<vmem>>, vector<16x16x16xf32>
    %c5 = arith.constant 5 : index
    %c0_40 = arith.constant 0 : index
    %c0_41 = arith.constant 0 : index
    %44 = vector.load %arg1[%c5, %c0_40, %c0_41] : memref<9x1x16xf32, #tpu.memory_space<vmem>>, vector<1x1x16xf32>
    %45 = vector.shape_cast %44 : vector<1x1x16xf32> to vector<1x16xf32>
    %46 = vector.shape_cast %45 : vector<1x16xf32> to vector<1x1x16xf32>
    %47 = vector.broadcast %46 : vector<1x1x16xf32> to vector<16x16x16xf32>
    %48 = arith.mulf %43, %47 : vector<16x16x16xf32>
    %49 = arith.addf %42, %48 : vector<16x16x16xf32>
    %c4_42 = arith.constant 4 : index
    %c0_43 = arith.constant 0 : index
    %c0_44 = arith.constant 0 : index
    %50 = vector.load %arg6[%c4_42, %c0_43, %c0_44] : memref<20x20x16xf32, #tpu.memory_space<vmem>>, vector<16x16x16xf32>
    %c6 = arith.constant 6 : index
    %c0_45 = arith.constant 0 : index
    %c0_46 = arith.constant 0 : index
    %51 = vector.load %arg1[%c6, %c0_45, %c0_46] : memref<9x1x16xf32, #tpu.memory_space<vmem>>, vector<1x1x16xf32>
    %52 = vector.shape_cast %51 : vector<1x1x16xf32> to vector<1x16xf32>
    %53 = vector.shape_cast %52 : vector<1x16xf32> to vector<1x1x16xf32>
    %54 = vector.broadcast %53 : vector<1x1x16xf32> to vector<16x16x16xf32>
    %55 = arith.mulf %50, %54 : vector<16x16x16xf32>
    %56 = arith.addf %49, %55 : vector<16x16x16xf32>
    %c4_47 = arith.constant 4 : index
    %c2_48 = arith.constant 2 : index
    %c0_49 = arith.constant 0 : index
    %57 = vector.load %arg6[%c4_47, %c2_48, %c0_49] : memref<20x20x16xf32, #tpu.memory_space<vmem>>, vector<16x16x16xf32>
    %c7 = arith.constant 7 : index
    %c0_50 = arith.constant 0 : index
    %c0_51 = arith.constant 0 : index
    %58 = vector.load %arg1[%c7, %c0_50, %c0_51] : memref<9x1x16xf32, #tpu.memory_space<vmem>>, vector<1x1x16xf32>
    %59 = vector.shape_cast %58 : vector<1x1x16xf32> to vector<1x16xf32>
    %60 = vector.shape_cast %59 : vector<1x16xf32> to vector<1x1x16xf32>
    %61 = vector.broadcast %60 : vector<1x1x16xf32> to vector<16x16x16xf32>
    %62 = arith.mulf %57, %61 : vector<16x16x16xf32>
    %63 = arith.addf %56, %62 : vector<16x16x16xf32>
    %c4_52 = arith.constant 4 : index
    %c4_53 = arith.constant 4 : index
    %c0_54 = arith.constant 0 : index
    %64 = vector.load %arg6[%c4_52, %c4_53, %c0_54] : memref<20x20x16xf32, #tpu.memory_space<vmem>>, vector<16x16x16xf32>
    %c8 = arith.constant 8 : index
    %c0_55 = arith.constant 0 : index
    %c0_56 = arith.constant 0 : index
    %65 = vector.load %arg1[%c8, %c0_55, %c0_56] : memref<9x1x16xf32, #tpu.memory_space<vmem>>, vector<1x1x16xf32>
    %66 = vector.shape_cast %65 : vector<1x1x16xf32> to vector<1x16xf32>
    %67 = vector.shape_cast %66 : vector<1x16xf32> to vector<1x1x16xf32>
    %68 = vector.broadcast %67 : vector<1x1x16xf32> to vector<16x16x16xf32>
    %69 = arith.mulf %64, %68 : vector<16x16x16xf32>
    %70 = arith.addf %63, %69 : vector<16x16x16xf32>
    %71 = vector.shape_cast %70 : vector<16x16x16xf32> to vector<256x16xf32>
    %c0_57 = arith.constant 0 : index
    %c0_58 = arith.constant 0 : index
    %72 = vector.load %arg2[%c0_57, %c0_58] : memref<16x32xf32, #tpu.memory_space<vmem>>, vector<16x32xf32>
    %cst_59 = arith.constant dense<0.000000e+00> : vector<256x32xf32>
    %73 = tpu.matmul %71, %72, %cst_59 {dimension_numbers = #tpu.dot_dimension_numbers<[1], [0], [0], [1], [0, 0, 1, 1], [], []>} : vector<256x16xf32>, vector<16x32xf32>, vector<256x32xf32> -> vector<256x32xf32>
    %c0_60 = arith.constant 0 : index
    %c0_61 = arith.constant 0 : index
    %74 = vector.load %arg3[%c0_60, %c0_61] : memref<1x32xf32, #tpu.memory_space<vmem>>, vector<1x32xf32>
    %75 = vector.broadcast %74 : vector<1x32xf32> to vector<256x32xf32>
    %76 = arith.addf %73, %75 : vector<256x32xf32>
    %c0_62 = arith.constant 0 : index
    %c0_63 = arith.constant 0 : index
    %c0_64 = arith.constant 0 : index
    %77 = vector.load %arg5[%c0_62, %c0_63, %c0_64] : memref<1x256x32xf32, #tpu.memory_space<vmem>>, vector<1x256x32xf32>
    %78 = vector.shape_cast %77 : vector<1x256x32xf32> to vector<256x32xf32>
    %79 = vector.shape_cast %76 : vector<256x32xf32> to vector<1x256x32xf32>
    tpu.vector_store %arg5[%c0_62, %c0_63, %c0_64], %79 {strides = array<i32>} : memref<1x256x32xf32, #tpu.memory_space<vmem>>, vector<1x256x32xf32>,
    return
  }
  func.func @transform_0(%arg0: i32) -> (i32, i32, i32) {
    %c0_i32 = arith.constant 0 : i32
    %c0_i32_0 = arith.constant 0 : i32
    %c0_i32_1 = arith.constant 0 : i32
    %c0_i32_2 = arith.constant 0 : i32
    return %c0_i32, %c0_i32_0, %c0_i32_1 : i32, i32, i32
  }
  func.func @transform_1(%arg0: i32) -> (i32, i32) {
    %c0_i32 = arith.constant 0 : i32
    %c0_i32_0 = arith.constant 0 : i32
    %c0_i32_1 = arith.constant 0 : i32
    return %c0_i32, %c0_i32_0 : i32, i32
  }
  func.func @transform_2(%arg0: i32) -> (i32, i32) {
    %c0_i32 = arith.constant 0 : i32
    %c0_i32_0 = arith.constant 0 : i32
    %c0_i32_1 = arith.constant 0 : i32
    return %c0_i32, %c0_i32_0 : i32, i32
  }
  func.func @transform_3(%arg0: i32) -> (i32, i32, i32, i32) {
    %c0_i32 = arith.constant 0 : i32
    %c0_i32_0 = arith.constant 0 : i32
    %c0_i32_1 = arith.constant 0 : i32
    %c0_i32_2 = arith.constant 0 : i32
    return %arg0, %c0_i32, %c0_i32_0, %c0_i32_1 : i32, i32, i32, i32
  }
  func.func @transform_4(%arg0: i32) -> (i32, i32, i32) {
    %c0_i32 = arith.constant 0 : i32
    %c0_i32_0 = arith.constant 0 : i32
    %c0_i32_1 = arith.constant 0 : i32
    return %arg0, %c0_i32, %c0_i32_0 : i32, i32, i32
  }
}

</mosaic_0001>

<bundles_post_ra>
// kernel: dil_conv.1
= control target key start
LH: loop header
LB: loop body
LE: loop exit
PB: predicated region body
PF: predicated region fallthrough
CT: control target
= control target key end

     0   :  { %9 = vsyncpa [#allocation5], 0  ;;  %s3244_s0 = inlined_call_operand.vmem [shape: f32[9,1,16], index: 0, kind: input, shape index: {}]   ;;  %s3245_s1 = inlined_call_operand.vmem [shape: f32[16,32], index: 1, kind: input, shape index: {}]   ;;  %s3246_s2 = inlined_call_operand.vmem [shape: f32[1,32], index: 2, kind: input, shape index: {}]   ;;  %s3247_s3 = inlined_call_operand.vmem [shape: f32[2,16,16,16], index: 3, kind: input, shape index: {}]   ;;  %s3248_s4 = inlined_call_operand.hbm [shape: f32[2,256,32], index: 4, kind: output, shape index: {}]  }
   0x1   :  { %11 = vsyncpa [#allocation5 + $0x1], 0  ;;  %s2030_s15 = smov 0   ;;  %s2032_s16 = smov 0  }
   0x2   :  { %s2034_s17 = smov 0   ;;  %s2036_s18 = smov 0  }
   0x3 LB: > { %s2051_s19 = sadd.s32 4294967295, %s1999_s18   ;;  %s1730_s20 = sadd.s32 4294967294, %s1999_s18   ;;  %s1999_s18 = sphi %s2036_s18, %s3407_s18   ;;  %s1995_s17 = sphi %s2034_s17, %s3406_s17   ;;  %s1991_s16 = sphi %s2032_s16, %s3405_s16   ;;  %s1987_s15 = sphi %s2030_s15, %s3404_s15  }
   0x4   : > { %s2055_s21 = sadd.s32 1, %s1999_s18   ;;  %s113_s22 = sadd.s32 1, %s1995_s17 }
   0x5   : > { %s110_s23 = ssub.s32 %s1999_s18, %s2055_s21  ;;  %p123_p0 = scmp.ne.s32.totalorder %s1995_s17, %s1991_s16 }
   0x6   : > { %p111_p1 = scmp.eq.s32.totalorder %s110_s23, 0  ;;  %p124_p2 = scmp.eq.s32.totalorder %s2051_s19, 1 }
   0x7   : > { %p129_p3 = scmp.ne.s32.totalorder %s1991_s16, %s1987_s15  ;;  %p130_p4 = scmp.eq.s32.totalorder %s1730_s20, 1 }
   0x8   : > { %s2066_s24 = scalar_select %p111_p1, %s1995_s17, %s113_s22  }
   0x9   : > { %p2068_p5 = por %p124_p2, %p123_p0  ;;  %p2072_p6 = por %p130_p4, %p129_p3 }
   0xa   : > { %p1733_p7 = scmp.ge.s32.totalorder %s1999_s18, 1  ;;  %p165_p8 = scmp.lt.s32.totalorder %s1999_s18, 3 }
   0xc   : > { %p166_p9 = pnand %p1733_p7, %p165_p8 }
   0xe   : > { %169 = sbr.rel (%p166_p9) target bundleno = 439 (0x1b7), region = 36 }
  0x15   : > { %v1291_v0 = vld [vmem:[%s3245_s1] sm:$0xff]  ;;  %v1292_v1 = vld [vmem:[%s3245_s1 + $0x8] sm:$0xff]  ;;  %p191_p10 = scmp.lt.s32.totalorder %s2051_s19, 1  ;;  %vm196_vm0 = vcmask 130048   ;;  %vm199_vm1 = vcmask 125952   ;;  %v2001_v3 = vmov 0.0  }
  0x16   : > { %v2085_v2 = vpack.c.bf16 %v1292_v1, %v1291_v0  ;;  %197 = vst.msk [vmem:[#allocation2] sm:$0xff] %vm196_vm0, %v2001_v3  ;;  %198 = vst.msk [vmem:[#allocation2 + $0x8] sm:$0xff] %vm196_vm0, %v2001_v3  ;;  %v2162_v4 = vld [vmem:[%s3244_s0] ss:$0 sm:$0xff]  ;;  %v2167_v5 = vld [vmem:[%s3244_s0 + $0x1] ss:$0 sm:$0xff] }
  0x17   : > { %204 = vst.msk [vmem:[#allocation2 + $0x30] sm:$0xff] %vm196_vm0, %v2001_v3  ;;  %205 = vst.msk [vmem:[#allocation2 + $0x38] sm:$0xff] %vm196_vm0, %v2001_v3  ;;  %s192_s5 = scalar_select %p191_p10, %s2051_s19, 1  ;;  %v2172_v6 = vld [vmem:[%s3244_s0 + $0x2] ss:$0 sm:$0xff]  ;;  %vm1621_vm2 = vcmask 261120  }
  0x18   : > { %206 = vst.msk [vmem:[#allocation2 + $0x40] sm:$0xf] %vm199_vm1, %v2001_v3  ;;  %212 = vst.msk [vmem:[#allocation2 + $0x70] sm:$0xf] %vm199_vm1, %v2001_v3  ;;  %1881 = vmatprep.subr.bf16.mxu0 %v2085_v2  ;;  %1884 = vmatprep.subr.bf16.mxu1 %v2085_v2  ;;  %v2201_v41 = vld [vmem:[%s3244_s0 + $0x3] ss:$0 sm:$0xff] }
  0x19   : > { %210 = vst.msk [vmem:[#allocation2 + $0x60] sm:$0xff] %vm196_vm0, %v2001_v3  ;;  %211 = vst.msk [vmem:[#allocation2 + $0x68] sm:$0xff] %vm196_vm0, %v2001_v3  ;;  %1883 = vmatpush3.bf16.msra.mxu0 %v2085_v2  ;;  %1885 = vmatpush3.bf16.msra.mxu1 %v2085_v2  ;;  %s1792_s6 = sshll.u32 %s192_s5, 8  ;;  %v2206_v42 = vld [vmem:[%s3244_s0 + $0x4] ss:$0 sm:$0xff]  ;;  %s188_s13 = sand.u32 1, %s1991_s16  }
  0x1a   : > { %200 = vst.msk [vmem:[#allocation2 + $0x10] sm:$0xf] %vm199_vm1, %v2001_v3  ;;  %203 = vst.msk [vmem:[#allocation2 + $0x28] sm:$0xf] %vm199_vm1, %v2001_v3  ;;  %s2157_s9 = scalar_lea.vmem %s3247_s3, %s1792_s6  ;;  %v2211_v43 = vld [vmem:[%s3244_s0 + $0x5] ss:$0 sm:$0xff] }
  0x1b   : > { %201 = vst.msk [vmem:[#allocation2 + $0x18] sm:$0xff] %vm196_vm0, %v2001_v3  ;;  %202 = vst.msk [vmem:[#allocation2 + $0x20] sm:$0xff] %vm196_vm0, %v2001_v3  ;;  %v258_v7 = vld [vmem:[%s2157_s9] sm:$0xff]  ;;  %v259_v8 = vld [vmem:[%s2157_s9 + $0x8] sm:$0xff]  ;;  %s1734_s14 = sshll.u32 %s188_s13, 8  ;;  %s1793_s27 = sshll.u32 %s2051_s19, 12 }
  0x1c   : > { %207 = vst.msk [vmem:[#allocation2 + $0x48] sm:$0xff] %vm196_vm0, %v2001_v3  ;;  %208 = vst.msk [vmem:[#allocation2 + $0x50] sm:$0xff] %vm196_vm0, %v2001_v3  ;;  %v262_v9 = vld [vmem:[%s2157_s9 + $0x20] sm:$0xff]  ;;  %v263_v10 = vld [vmem:[%s2157_s9 + $0x28] sm:$0xff]  ;;  %v290_v11 = vmax.f32 %v258_v7, 0.0  ;;  %v291_v12 = vmax.f32 %v259_v8, 0.0  ;;  %s3192_s5 = scalar_lea.hbm %s3248_s4, %s1793_s27 }
  0x1d   : > { %209 = vst.msk [vmem:[#allocation2 + $0x58] sm:$0xf] %vm199_vm1, %v2001_v3  ;;  %215 = vst.msk [vmem:[#allocation2 + $0x88] sm:$0xf] %vm199_vm1, %v2001_v3  ;;  %v294_v13 = vmax.f32 %v262_v9, 0.0  ;;  %v270_v14 = vld [vmem:[%s2157_s9 + $0x60] sm:$0xff] }
  0x1e   : > { %213 = vst.msk [vmem:[#allocation2 + $0x78] sm:$0xff] %vm196_vm0, %v2001_v3  ;;  %214 = vst.msk [vmem:[#allocation2 + $0x80] sm:$0xff] %vm196_vm0, %v2001_v3  ;;  %v271_v15 = vld [vmem:[%s2157_s9 + $0x68] sm:$0xff]  ;;  %v295_v16 = vmax.f32 %v263_v10, 0.0  ;;  %v355_v17 = vld [vmem:[#allocation2] sm:$0xff]  ;;  %v302_v20 = vmax.f32 %v270_v14, 0.0 }
  0x1f   : > { %216 = vst.msk [vmem:[#allocation2 + $0x90] sm:$0xff] %vm196_vm0, %v2001_v3  ;;  %217 = vst.msk [vmem:[#allocation2 + $0x98] sm:$0xff] %vm196_vm0, %v2001_v3  ;;  %v458_v18 = vld [vmem:[#allocation2 + $0x2] sm:$0xff]  ;;  %v303_v21 = vmax.f32 %v271_v15, 0.0  ;;  %v394_v22 = vmul.f32 %v2162_v4, %v355_v17  ;;  %v260_v39 = vld [vmem:[%s2157_s9 + $0x10] sm:$0xff]  ;;  %s3096_s23 = scalar_lea.vmem [#allocation4], %s1734_s14 }
  0x20   : > { %218 = vst.msk [vmem:[#allocation2 + $0xa0] sm:$0xf] %vm199_vm1, %v2001_v3  ;;  %221 = vst.msk [vmem:[#allocation2 + $0xb8] sm:$0xf] %vm199_vm1, %v2001_v3  ;;  %v562_v19 = vld [vmem:[#allocation2 + $0x4] sm:$0xff]  ;;  %v498_v23 = vmul.f32 %v2167_v5, %v458_v18  ;;  %v261_v40 = vld [vmem:[%s2157_s9 + $0x18] sm:$0xff] }
  0x21   : > { %219 = vst.msk [vmem:[#allocation2 + $0xa8] sm:$0xff] %vm196_vm0, %v2001_v3  ;;  %220 = vst.msk [vmem:[#allocation2 + $0xb0] sm:$0xff] %vm196_vm0, %v2001_v3  ;;  %v356_v24 = vld [vmem:[#allocation2 + $0x8] sm:$0xff]  ;;  %v602_v27 = vmul.f32 %v2172_v6, %v562_v19  ;;  %v274_v31 = vld [vmem:[%s2157_s9 + $0x80] sm:$0xff]  ;;  %v292_v48 = vmax.f32 %v260_v39, 0.0  ;;  %v293_v49 = vmax.f32 %v261_v40, 0.0 }
  0x22   : > { %222 = vst.msk [vmem:[#allocation2 + $0xc0] sm:$0xff] %vm196_vm0, %v2001_v3  ;;  %223 = vst.msk [vmem:[#allocation2 + $0xc8] sm:$0xff] %vm196_vm0, %v2001_v3  ;;  %v459_v25 = vld [vmem:[#allocation2 + $0xa] sm:$0xff]  ;;  %v395_v28 = vmul.f32 %v2162_v4, %v356_v24  ;;  %v278_v33 = vld [vmem:[%s2157_s9 + $0xa0] sm:$0xff]  ;;  %v530_v34 = vadd.f32 %v498_v23, %v394_v22  ;;  %v306_v36 = vmax.f32 %v274_v31, 0.0  ;;  %s1668_s28 = sshll.u32 %s3096_s23, 4  ;;  %s3194_s28 = int_to_ptr.vmem [resolvable:$true] %s1668_s28 }
  0x23   : > { %224 = vst.msk [vmem:[#allocation2 + $0xd0] sm:$0xf] %vm199_vm1, %v2001_v3  ;;  %227 = vst.msk [vmem:[#allocation2 + $0xe8] sm:$0xf] %vm199_vm1, %v2001_v3  ;;  %v563_v26 = vld [vmem:[#allocation2 + $0xc] sm:$0xff]  ;;  %v499_v29 = vmul.f32 %v2167_v5, %v459_v25  ;;  %v310_v38 = vmax.f32 %v278_v33, 0.0 }
  0x24   : > { %225 = vst.msk [vmem:[#allocation2 + $0xd8] sm:$0xff] %vm196_vm0, %v2001_v3  ;;  %226 = vst.msk [vmem:[#allocation2 + $0xe0] sm:$0xff] %vm196_vm0, %v2001_v3  ;;  %v603_v30 = vmul.f32 %v2172_v6, %v563_v26  ;;  %v275_v32 = vld [vmem:[%s2157_s9 + $0x88] sm:$0xff]  ;;  %v264_v46 = vld [vmem:[%s2157_s9 + $0x30] sm:$0xff]  ;;  %v634_v60 = vadd.f32 %v602_v27, %v530_v34  ;;  %s3203_s19 = scalar_lea.sflag [#allocation5], %s188_s13  ;;  %s1937_s6 = scalar_lea.vmem %s3194_s28, 4096 }
  0x25   : > { %228 = vst.msk [vmem:[#allocation2 + $0xf0] sm:$0xff] %vm196_vm0, %v2001_v3  ;;  %229 = vst.msk [vmem:[#allocation2 + $0xf8] sm:$0xff] %vm196_vm0, %v2001_v3  ;;  %v279_v35 = vld [vmem:[%s2157_s9 + $0xa8] sm:$0xff]  ;;  %v307_v37 = vmax.f32 %v275_v32, 0.0  ;;  %v531_v44 = vadd.f32 %v499_v29, %v395_v28  ;;  %v265_v47 = vld [vmem:[%s2157_s9 + $0x38] sm:$0xff]  ;;  %v296_v54 = vmax.f32 %v264_v46, 0.0  ;;  %p1938_p11 = scmp.ne.s32.totalorder %s3194_s28, %s1937_s6 }
  0x26   : > { %230 = vst.msk [vmem:[#allocation2 + $0x100] sm:$0xf] %vm199_vm1, %v2001_v3  ;;  %233 = vst.msk [vmem:[#allocation2 + $0x118] sm:$0xf] %vm199_vm1, %v2001_v3  ;;  %v311_v45 = vmax.f32 %v279_v35, 0.0  ;;  %v357_v50 = vld [vmem:[#allocation2 + $0x18] sm:$0xff] }
  0x27   : > { %231 = vst.msk [vmem:[#allocation2 + $0x108] sm:$0xff] %vm196_vm0, %v2001_v3  ;;  %232 = vst.msk [vmem:[#allocation2 + $0x110] sm:$0xff] %vm196_vm0, %v2001_v3  ;;  %v2218_v51 = vld [vmem:[%s3244_s0 + $0x6] ss:$0 sm:$0xff]  ;;  %v2223_v52 = vld [vmem:[%s3244_s0 + $0x7] ss:$0 sm:$0xff]  ;;  %v396_v56 = vmul.f32 %v2162_v4, %v357_v50  ;;  %v635_v2 = vadd.f32 %v603_v30, %v531_v44  ;;  %p1939_p12 = pnand %p1938_p11, %p2068_p5 }
  0x28   : > { %234 = vst.msk [vmem:[#allocation2 + $0x120] sm:$0xff] %vm196_vm0, %v2001_v3  ;;  %235 = vst.msk [vmem:[#allocation2 + $0x128] sm:$0xff] %vm196_vm0, %v2001_v3  ;;  %v2228_v53 = vld [vmem:[%s3244_s0 + $0x8] ss:$0 sm:$0xff]  ;;  %v297_v55 = vmax.f32 %v265_v47, 0.0  ;;  %v460_v57 = vld [vmem:[#allocation2 + $0x1a] sm:$0xff] }
  0x29   : > { %236 = vst.msk [vmem:[#allocation2 + $0x130] sm:$0xf] %vm199_vm1, %v2001_v3  ;;  %239 = vst.msk [vmem:[#allocation2 + $0x148] sm:$0xf] %vm199_vm1, %v2001_v3  ;;  %v564_v58 = vld [vmem:[#allocation2 + $0x1c] sm:$0xff]  ;;  %v500_v61 = vmul.f32 %v2167_v5, %v460_v57  ;;  %v565_v0 = vld [vmem:[#allocation2 + $0x24] sm:$0xff]  ;;  %p1940_p13 = pneg %p1939_p12 }
  0x2a   : > { %237 = vst.msk [vmem:[#allocation2 + $0x138] sm:$0xff] %vm196_vm0, %v2001_v3  ;;  %238 = vst.msk [vmem:[#allocation2 + $0x140] sm:$0xff] %vm196_vm0, %v2001_v3  ;;  %v358_v59 = vld [vmem:[#allocation2 + $0x20] sm:$0xff]  ;;  %v272_v1 = vld [vmem:[%s2157_s9 + $0x70] sm:$0xff]  ;;  %v605_v25 = vmul.f32 %v2172_v6, %v565_v0  ;;  %s2002_s7 = smov [#allocation4]  }
  0x2b   : > { %240 = vst.msk [vmem:[#allocation2 + $0x150] sm:$0xff] %vm196_vm0, %v2001_v3  ;;  %241 = vst.msk [vmem:[#allocation2 + $0x158] sm:$0xff] %vm196_vm0, %v2001_v3  ;;  %v397_v62 = vmul.f32 %v2162_v4, %v358_v59  ;;  %v461_v63 = vld [vmem:[#allocation2 + $0x22] sm:$0xff]  ;;  %v273_v8 = vld [vmem:[%s2157_s9 + $0x78] sm:$0xff]  ;;  %v532_v15 = vadd.f32 %v500_v61, %v396_v56  ;;  %s1941_s8 = sshll.u32 %s2002_s7, 4  ;;  %s1942_s8 = int_to_ptr.vmem [resolvable:$false] %s1941_s8 }
  0x2c   : > { %242 = vst.msk [vmem:[#allocation2 + $0x160] sm:$0xf] %vm199_vm1, %v2001_v3  ;;  %245 = vst.msk [vmem:[#allocation2 + $0x178] sm:$0xf] %vm199_vm1, %v2001_v3  ;;  %v501_v7 = vmul.f32 %v2167_v5, %v461_v63  ;;  %v276_v9 = vld [vmem:[%s2157_s9 + $0x90] sm:$0xff]  ;;  %v277_v10 = vld [vmem:[%s2157_s9 + $0x98] sm:$0xff]  ;;  %p1944_p0 = scmp.lt.s32.totalorder %s3194_s28, %s1942_s8 }
  0x2d   : > { %243 = vst.msk [vmem:[#allocation2 + $0x168] sm:$0xff] %vm196_vm0, %v2001_v3  ;;  %244 = vst.msk [vmem:[#allocation2 + $0x170] sm:$0xff] %vm196_vm0, %v2001_v3  ;;  %v308_v17 = vmax.f32 %v276_v9, 0.0  ;;  %v309_v18 = vmax.f32 %v277_v10, 0.0 }
  0x2e   : > { %246 = vst.msk [vmem:[#allocation2 + $0x180] sm:$0xff] %vm196_vm0, %v2001_v3  ;;  %247 = vst.msk [vmem:[#allocation2 + $0x188] sm:$0xff] %vm196_vm0, %v2001_v3  ;;  %v533_v32 = vadd.f32 %v501_v7, %v397_v62 }
  0x2f   : > { %248 = vst.msk [vmem:[#allocation2 + $0x190] sm:$0xf] %vm199_vm1, %v2001_v3  ;;  %251 = vst.msk [vmem:[#allocation2 + $0x1a8] sm:$0xf] %vm199_vm1, %v2001_v3 }
  0x30   : > { %249 = vst.msk [vmem:[#allocation2 + $0x198] sm:$0xff] %vm196_vm0, %v2001_v3  ;;  %250 = vst.msk [vmem:[#allocation2 + $0x1a0] sm:$0xff] %vm196_vm0, %v2001_v3 }
  0x31   : > { %252 = vst.msk [vmem:[#allocation2 + $0x1b0] sm:$0xff] %vm196_vm0, %v2001_v3  ;;  %253 = vst.msk [vmem:[#allocation2 + $0x1b8] sm:$0xff] %vm196_vm0, %v2001_v3 }
  0x32   : > { %254 = vst.msk [vmem:[#allocation2 + $0x1c0] sm:$0xf] %vm199_vm1, %v2001_v3  ;;  %257 = vst.msk [vmem:[#allocation2 + $0x1d8] sm:$0xf] %vm199_vm1, %v2001_v3 }
  0x33   : > { %255 = vst.msk [vmem:[#allocation2 + $0x1c8] sm:$0xff] %vm196_vm0, %v2001_v3  ;;  %256 = vst.msk [vmem:[#allocation2 + $0x1d0] sm:$0xff] %vm196_vm0, %v2001_v3  ;;  %v604_v3 = vmul.f32 %v2172_v6, %v564_v58 }
  0x34   : > { %323 = vst.msk [vmem:[#allocation2 + $0x32] sm:$0xff] %vm196_vm0, %v290_v11  ;;  %324 = vst.msk [vmem:[#allocation2 + $0x3a] sm:$0xff] %vm196_vm0, %v291_v12  ;;  %v304_v11 = vmax.f32 %v272_v1, 0.0 }
  0x35   : > { %327 = vst.msk [vmem:[#allocation2 + $0x62] sm:$0xff] %vm196_vm0, %v294_v13  ;;  %328 = vst.msk [vmem:[#allocation2 + $0x6a] sm:$0xff] %vm196_vm0, %v295_v16  ;;  %v305_v16 = vmax.f32 %v273_v8, 0.0  ;;  %v2296_v39 = vadd.f32 %v604_v3, %v532_v15 }
  0x36   : > { %335 = vst.msk [vmem:[#allocation2 + $0xc2] sm:$0xff] %vm196_vm0, %v302_v20  ;;  %336 = vst.msk [vmem:[#allocation2 + $0xca] sm:$0xff] %vm196_vm0, %v303_v21 }
  0x37   : > { %339 = vst.msk [vmem:[#allocation2 + $0xf2] sm:$0xff] %vm196_vm0, %v306_v36  ;;  %340 = vst.msk [vmem:[#allocation2 + $0xfa] sm:$0xff] %vm196_vm0, %v307_v37 }
  0x38   : > { %343 = vst.msk [vmem:[#allocation2 + $0x122] sm:$0xff] %vm196_vm0, %v310_v38  ;;  %344 = vst.msk [vmem:[#allocation2 + $0x12a] sm:$0xff] %vm196_vm0, %v311_v45 }
  0x39   : > { %325 = vst.msk [vmem:[#allocation2 + $0x4a] sm:$0xff] %vm196_vm0, %v292_v48  ;;  %326 = vst.msk [vmem:[#allocation2 + $0x52] sm:$0xff] %vm196_vm0, %v293_v49 }
  0x3a   : > { %329 = vst.msk [vmem:[#allocation2 + $0x7a] sm:$0xff] %vm196_vm0, %v296_v54  ;;  %330 = vst.msk [vmem:[#allocation2 + $0x82] sm:$0xff] %vm196_vm0, %v297_v55 }
  0x3b   : > { %v2247_v12 = vld [vmem:[#allocation2 + $0x30] sm:$0xff]  ;;  %337 = vst.msk [vmem:[#allocation2 + $0xda] sm:$0xff] %vm196_vm0, %v304_v11  ;;  %v2277_v29 = vld [vmem:[#allocation2 + $0x38] sm:$0xff]  ;;  %338 = vst.msk [vmem:[#allocation2 + $0xe2] sm:$0xff] %vm196_vm0, %v305_v16 }
  0x3c   : > { %v2249_v13 = vld [vmem:[#allocation2 + $0x32] sm:$0xff]  ;;  %v706_v19 = vmul.f32 %v2201_v41, %v2247_v12  ;;  %v2259_v22 = vld [vmem:[#allocation2 + $0x60] sm:$0xff]  ;;  %341 = vst.msk [vmem:[#allocation2 + $0x10a] sm:$0xff] %vm196_vm0, %v308_v17  ;;  %342 = vst.msk [vmem:[#allocation2 + $0x112] sm:$0xff] %vm196_vm0, %v309_v18  ;;  %v707_v34 = vmul.f32 %v2201_v41, %v2277_v29 }
  0x3d   : > { %v2251_v14 = vld [vmem:[#allocation2 + $0x34] sm:$0xff]  ;;  %v810_v20 = vmul.f32 %v2206_v42, %v2249_v13  ;;  %v2261_v23 = vld [vmem:[#allocation2 + $0x62] sm:$0xff]  ;;  %v1019_v26 = vmul.f32 %v2218_v51, %v2259_v22  ;;  %v2292_v37 = vld [vmem:[#allocation2 + $0x6a] sm:$0xff] }
  0x3e   : > { %v914_v21 = vmul.f32 %v2211_v43, %v2251_v14  ;;  %v2263_v24 = vld [vmem:[#allocation2 + $0x64] sm:$0xff]  ;;  %v2271_v27 = vmul.f32 %v2223_v52, %v2261_v23  ;;  %v2279_v30 = vld [vmem:[#allocation2 + $0x3a] sm:$0xff]  ;;  %v738_v33 = vadd.f32 %v706_v19, %v634_v60  ;;  %v2294_v38 = vld [vmem:[#allocation2 + $0x6c] sm:$0xff]  ;;  %v1124_v45 = vmul.f32 %v2223_v52, %v2292_v37 }
  0x3f   : > { %v2275_v28 = vmul.f32 %v2228_v53, %v2263_v24  ;;  %v2281_v31 = vld [vmem:[#allocation2 + $0x3c] sm:$0xff]  ;;  %v811_v35 = vmul.f32 %v2206_v42, %v2279_v30  ;;  %v2290_v36 = vld [vmem:[#allocation2 + $0x68] sm:$0xff]  ;;  %v2306_v46 = vmul.f32 %v2228_v53, %v2294_v38  ;;  %v739_v54 = vadd.f32 %v707_v34, %v635_v2  ;;  %v2318_v57 = vld [vmem:[#allocation2 + $0xf0] sm:$0xff] }
  0x40   : > { %v915_v40 = vmul.f32 %v2211_v43, %v2281_v31  ;;  %v1020_v44 = vmul.f32 %v2218_v51, %v2290_v36  ;;  %v2308_v47 = vld [vmem:[#allocation2 + $0xc0] sm:$0xff]  ;;  %v842_v50 = vadd.f32 %v810_v20, %v738_v33  ;;  %v2320_v58 = vld [vmem:[#allocation2 + $0xf2] sm:$0xff]  ;;  %v722_v61 = vmul.f32 %v2201_v41, %v2318_v57  ;;  %v2340_v10 = vld [vmem:[#allocation2 + $0xc8] sm:$0xff] }
  0x41   : > { %3312 = vst [vmem:[#allocation7_spill] sm:$0xff] %v2308_v47  ;;  %v2310_v48 = vld [vmem:[#allocation2 + $0xc2] sm:$0xff]  ;;  %v410_v55 = vmul.f32 %v2162_v4, %v2308_v47  ;;  %v2322_v59 = vld [vmem:[#allocation2 + $0xf4] sm:$0xff]  ;;  %v826_v62 = vmul.f32 %v2206_v42, %v2320_v58  ;;  %v2336_v2 = vadd.f32 %v605_v25, %v533_v32  ;;  %v843_v7 = vadd.f32 %v811_v35, %v739_v54  ;;  %v2342_v11 = vld [vmem:[#allocation2 + $0xca] sm:$0xff] }
  0x42   : > { %3313 = vst [vmem:[#allocation8_spill] sm:$0xff] %v2310_v48  ;;  %v2312_v49 = vld [vmem:[#allocation2 + $0xc4] sm:$0xff]  ;;  %v514_v56 = vmul.f32 %v2167_v5, %v2310_v48  ;;  %v946_v3 = vadd.f32 %v914_v21, %v842_v50  ;;  %v930_v9 = vmul.f32 %v2211_v43, %v2322_v59  ;;  %3316 = vst [vmem:[#allocation11_spill] sm:$0xff] %v2340_v10  ;;  %v2344_v15 = vld [vmem:[#allocation2 + $0xcc] sm:$0xff] }
  0x43   : > { %3314 = vst [vmem:[#allocation9_spill] sm:$0xff] %v2312_v49  ;;  %v618_v60 = vmul.f32 %v2172_v6, %v2312_v49  ;;  %v2330_v63 = vld [vmem:[#allocation2 + $0x120] sm:$0xff]  ;;  %3317 = vst [vmem:[#allocation12_spill] sm:$0xff] %v2342_v11  ;;  %v411_v18 = vmul.f32 %v2162_v4, %v2340_v10  ;;  %v515_v19 = vmul.f32 %v2167_v5, %v2342_v11  ;;  %v2356_v20 = vld [vmem:[#allocation2 + $0xf8] sm:$0xff] }
  0x44   : > { %v2332_v0 = vld [vmem:[#allocation2 + $0x122] sm:$0xff]  ;;  %v546_v8 = vadd.f32 %v514_v56, %v410_v55  ;;  %3318 = vst [vmem:[#allocation13_spill] sm:$0xff] %v2344_v15  ;;  %v1035_v16 = vmul.f32 %v2218_v51, %v2330_v63  ;;  %v2358_v21 = vld [vmem:[#allocation2 + $0xfa] sm:$0xff]  ;;  %v1051_v32 = vadd.f32 %v1019_v26, %v946_v3  ;;  %v947_v33 = vadd.f32 %v915_v40, %v843_v7  ;;  %v2366_v54 = vld [vmem:[#allocation2 + $0x12a] sm:$0xff] }
  0x45   : > { %v2334_v1 = vld [vmem:[#allocation2 + $0x124] sm:$0xff]  ;;  %v2350_v17 = vmul.f32 %v2223_v52, %v2332_v0  ;;  %v2360_v25 = vld [vmem:[#allocation2 + $0xfc] sm:$0xff]  ;;  %v619_v35 = vmul.f32 %v2172_v6, %v2344_v15  ;;  %3320 = vst [vmem:[#allocation15_spill] sm:$0xff] %v2366_v54  ;;  %v547_v56 = vadd.f32 %v515_v19, %v411_v18  ;;  %v723_v11 = vmul.f32 %v2201_v41, %v2356_v20  ;;  %v2383_v10 = vld [vmem:[#allocation2 + $0x12c] sm:$0xff] }
  0x46   : > { %3315 = vst [vmem:[#allocation10_spill] sm:$0xff] %v2334_v1  ;;  %v650_v34 = vadd.f32 %v618_v60, %v546_v8  ;;  %v2364_v50 = vld [vmem:[#allocation2 + $0x128] sm:$0xff]  ;;  %v2370_v55 = vmul.f32 %v2228_v53, %v2334_v1  ;;  %v827_v26 = vmul.f32 %v2206_v42, %v2358_v21  ;;  %v1155_v3 = vadd.f32 %v2271_v27, %v1051_v32  ;;  %v2393_v27 = vld [vmem:[#allocation2 + $0x78] sm:$0xff] }
  0x47   : > { %3319 = vst [vmem:[#allocation14_spill] sm:$0xff] %v2364_v50  ;;  %v2376_v40 = vld [vmem:[#allocation2 + $0x48] sm:$0xff]  ;;  %v1052_v7 = vadd.f32 %v1020_v44, %v947_v33  ;;  %v931_v15 = vmul.f32 %v2211_v43, %v2360_v25  ;;  %3323 = vst [vmem:[#allocation18_spill] sm:$0xff] %v2383_v10  ;;  %v651_v19 = vadd.f32 %v619_v35, %v547_v56  ;;  %v2395_v44 = vld [vmem:[#allocation2 + $0x7a] sm:$0xff] }
  0x48   : > { %3321 = vst [vmem:[#allocation16_spill] sm:$0xff] %v2376_v40  ;;  %v2378_v60 = vld [vmem:[#allocation2 + $0x4a] sm:$0xff]  ;;  %v754_v8 = vadd.f32 %v722_v61, %v650_v34  ;;  %v1036_v49 = vmul.f32 %v2218_v51, %v2364_v50  ;;  %v1140_v48 = vmul.f32 %v2223_v52, %v2366_v54  ;;  %v708_v47 = vmul.f32 %v2201_v41, %v2376_v40  ;;  %v2402_v56 = vld [vmem:[#allocation2 + $0x52] sm:$0xff] }
  0x49   : > { %3322 = vst [vmem:[#allocation17_spill] sm:$0xff] %v2378_v60  ;;  %v2385_v18 = vld [vmem:[#allocation2 + $0x4c] sm:$0xff]  ;;  %3325 = vst [vmem:[#allocation20_spill] sm:$0xff] %v2393_v27  ;;  %v1259_v61 = vadd.f32 %v2275_v28, %v1155_v3  ;;  %v1156_v32 = vadd.f32 %v1124_v45, %v1052_v7  ;;  %v812_v34 = vmul.f32 %v2206_v42, %v2378_v60  ;;  %v2411_v45 = vld [vmem:[#allocation2 + $0x7c] sm:$0xff] }
  0x4a   : > { %3324 = vst [vmem:[#allocation19_spill] sm:$0xff] %v2385_v18  ;;  %3326 = vst [vmem:[#allocation21_spill] sm:$0xff] %v2395_v44  ;;  %v858_v33 = vadd.f32 %v826_v62, %v754_v8  ;;  %v2400_v35 = vld [vmem:[#allocation2 + $0x50] sm:$0xff]  ;;  %v755_v50 = vadd.f32 %v723_v11, %v651_v19  ;;  %v2406_v54 = vmul.f32 %v2228_v53, %v2383_v10  ;;  %v2415_v3 = vld [vmem:[#allocation2 + $0x80] sm:$0xff] }
  0x4b   : > { %3327 = vst [vmem:[#allocation22_spill] sm:$0xff] %v2400_v35  ;;  %3328 = vst [vmem:[#allocation23_spill] sm:$0xff] %v2402_v56  ;;  %v740_v40 = vadd.f32 %v708_v47, %v2296_v39  ;;  %v916_v28 = vmul.f32 %v2211_v43, %v2385_v18  ;;  %v2413_v62 = vld [vmem:[#allocation2 + $0x54] sm:$0xff]  ;;  %1832 = vmatprep.mubr.msk.f32.mxu0 %vm196_vm0, %v1259_v61  ;;  %v1260_v11 = vadd.f32 %v2306_v46, %v1156_v32  ;;  %v2423_v47 = vld [vmem:[#allocation2 + $0x82] sm:$0xff] }
  0x4c   : > { %3329 = vst [vmem:[#allocation24_spill] sm:$0xff] %v2411_v45  ;;  %3330 = vst [vmem:[#allocation25_spill] sm:$0xff] %v2413_v62  ;;  %v962_v7 = vadd.f32 %v930_v9, %v858_v33  ;;  %v1021_v8 = vmul.f32 %v2218_v51, %v2393_v27  ;;  %v1125_v39 = vmul.f32 %v2223_v52, %v2395_v44  ;;  %v280_v61 = vld [vmem:[%s2157_s9 + $0xb0] sm:$0xff]  ;;  %v281_v1 = vld [vmem:[%s2157_s9 + $0xb8] sm:$0xff] }
  0x4d   : > { %3331 = vst [vmem:[#allocation26_spill] sm:$0xff] %v2415_v3  ;;  %3332 = vst [vmem:[#allocation27_spill] sm:$0xff] %v2423_v47  ;;  %v859_v19 = vadd.f32 %v827_v26, %v755_v50  ;;  %v844_v18 = vadd.f32 %v812_v34, %v740_v40  ;;  %v709_v60 = vmul.f32 %v2201_v41, %v2400_v35  ;;  %v2431_v46 = vld [vmem:[#allocation2 + $0xd8] sm:$0xff]  ;;  %1833 = vmatmul.mubr.msk.f32.vlgmr.msra.gmra.mrb[0].mxu0 %vm196_vm0, %v1260_v11  ;;  %v2445_v11 = vld [vmem:[#allocation2 + $0x84] sm:$0xff] }
  0x4e   : > { %v813_v10 = vmul.f32 %v2206_v42, %v2402_v56  ;;  %3333 = vst [vmem:[#allocation28_spill] sm:$0xff] %v2431_v46  ;;  %v1067_v9 = vadd.f32 %v1035_v16, %v962_v7  ;;  %v1229_v32 = vmul.f32 %v2228_v53, %v2411_v45  ;;  %v917_v50 = vmul.f32 %v2211_v43, %v2413_v62  ;;  %v2440_v40 = vld [vmem:[#allocation2 + $0xda] sm:$0xff]  ;;  %v2449_v7 = vld [vmem:[#allocation2 + $0x108] sm:$0xff] }
  0x4f   : > { %v1022_v26 = vmul.f32 %v2218_v51, %v2415_v3  ;;  %3334 = vst [vmem:[#allocation29_spill] sm:$0xff] %v2440_v40  ;;  %v963_v33 = vadd.f32 %v931_v15, %v859_v19  ;;  %v948_v34 = vadd.f32 %v916_v28, %v844_v18  ;;  %v741_v44 = vadd.f32 %v709_v60, %v2336_v2  ;;  %v2447_v16 = vld [vmem:[#allocation2 + $0xdc] sm:$0xff]  ;;  %v2454_v15 = vld [vmem:[#allocation2 + $0x10a] sm:$0xff] }
  0x50   : > { %v1126_v56 = vmul.f32 %v2223_v52, %v2423_v47  ;;  %3335 = vst [vmem:[#allocation30_spill] sm:$0xff] %v2447_v16  ;;  %v1171_v45 = vadd.f32 %v2350_v17, %v1067_v9  ;;  %v312_v62 = vmax.f32 %v280_v61, 0.0  ;;  %v313_v35 = vmax.f32 %v281_v1, 0.0  ;;  %v2458_v19 = vld [vmem:[#allocation2 + $0xe0] sm:$0xff] }
  0x51   : > { %v412_v3 = vmul.f32 %v2162_v4, %v2431_v46  ;;  %v1068_v18 = vadd.f32 %v1036_v49, %v963_v33  ;;  %v1053_v2 = vadd.f32 %v1021_v8, %v948_v34  ;;  %v845_v60 = vadd.f32 %v813_v10, %v741_v44  ;;  %3336 = vst [vmem:[#allocation31_spill] sm:$0xff] %v2458_v19  ;;  %v2460_v47 = vld [vmem:[#allocation2 + $0xe2] sm:$0xff] }
  0x52   : > { %v516_v28 = vmul.f32 %v2167_v5, %v2440_v40  ;;  %3337 = vst [vmem:[#allocation32_spill] sm:$0xff] %v2460_v47  ;;  %v2462_v27 = vld [vmem:[#allocation2 + $0xe4] sm:$0xff]  ;;  %v1275_v17 = vadd.f32 %v2370_v55, %v1171_v45  ;;  %v1230_v1 = vmul.f32 %v2228_v53, %v2445_v11  ;;  %345 = vst.msk [vmem:[#allocation2 + $0x13a] sm:$0xff] %vm196_vm0, %v312_v62  ;;  %v2473_v55 = vld [vmem:[#allocation2 + $0x10c] sm:$0xff] }
  0x53   : > { %3338 = vst [vmem:[#allocation33_spill] sm:$0xff] %v2462_v27  ;;  %346 = vst.msk [vmem:[#allocation2 + $0x142] sm:$0xff] %vm196_vm0, %v313_v35  ;;  %v620_v49 = vmul.f32 %v2172_v6, %v2447_v16  ;;  %v724_v10 = vmul.f32 %v2201_v41, %v2449_v7  ;;  %v1172_v44 = vadd.f32 %v1140_v48, %v1068_v18  ;;  %v2475_v45 = vld [vmem:[#allocation2 + $0x110] sm:$0xff] }
  0x54   : > { %v1157_v8 = vadd.f32 %v1125_v39, %v1053_v2  ;;  %v949_v61 = vadd.f32 %v917_v50, %v845_v60  ;;  %v548_v9 = vadd.f32 %v516_v28, %v412_v3  ;;  %1856 = vmatprep.mubr.msk.f32.mxu1 %vm196_vm0, %v1275_v17  ;;  %v828_v62 = vmul.f32 %v2206_v42, %v2454_v15  ;;  %v266_v39 = vld [vmem:[%s2157_s9 + $0x40] sm:$0xff]  ;;  %v267_v3 = vld [vmem:[%s2157_s9 + $0x48] sm:$0xff]  ;;  %v2489_v60 = vld [vmem:[#allocation2 + $0x112] sm:$0xff] }
  0x55   : > { %v413_v35 = vmul.f32 %v2162_v4, %v2458_v19  ;;  %v517_v33 = vmul.f32 %v2167_v5, %v2460_v47  ;;  %v621_v48 = vmul.f32 %v2172_v6, %v2462_v27  ;;  %v1276_v50 = vadd.f32 %v2406_v54, %v1172_v44  ;;  %v2495_v47 = vld [vmem:[#allocation2 + $0x114] sm:$0xff] }
  0x56   : > { %v1261_v34 = vadd.f32 %v1229_v32, %v1157_v8  ;;  %v1054_v18 = vadd.f32 %v1022_v26, %v949_v61  ;;  %v652_v2 = vadd.f32 %v620_v49, %v548_v9  ;;  %v932_v28 = vmul.f32 %v2211_v43, %v2473_v55 }
  0x57   : > { %v549_v17 = vadd.f32 %v517_v33, %v413_v35  ;;  %v725_v19 = vmul.f32 %v2201_v41, %v2475_v45  ;;  %1857 = vmatmul.mubr.msk.f32.vlgmr.msra.gmra.mrb[0].mxu1 %vm196_vm0, %v1276_v50  ;;  %v298_v32 = vmax.f32 %v266_v39, 0.0  ;;  %v299_v26 = vmax.f32 %v267_v3, 0.0 }
  0x58   : > { %1835 = vmatprep.mubr.msk.f32.mxu0 %vm196_vm0, %v1261_v34  ;;  %v1158_v27 = vadd.f32 %v1126_v56, %v1054_v18  ;;  %v756_v54 = vadd.f32 %v724_v10, %v652_v2  ;;  %v829_v44 = vmul.f32 %v2206_v42, %v2489_v60  ;;  %v398_v8 = vmul.f32 %v2162_v4, %v2247_v12 }
  0x59   : > { %v653_v49 = vadd.f32 %v621_v48, %v549_v17  ;;  %v502_v61 = vmul.f32 %v2167_v5, %v2249_v13  ;;  %v2505_v33 = vld [vmem:[#allocation2 + $0x138] sm:$0xff]  ;;  %v933_v10 = vmul.f32 %v2211_v43, %v2495_v47  ;;  %331 = vst.msk [vmem:[#allocation2 + $0x92] sm:$0xff] %vm196_vm0, %v298_v32  ;;  %332 = vst.msk [vmem:[#allocation2 + $0x9a] sm:$0xff] %vm196_vm0, %v299_v26  ;;  %v283_v32 = vld [vmem:[%s2157_s9 + $0xc8] sm:$0xff] }
  0x5a   : > { %v1262_v9 = vadd.f32 %v1230_v1, %v1158_v27  ;;  %v860_v35 = vadd.f32 %v828_v62, %v756_v54  ;;  %v2507_v50 = vld [vmem:[#allocation2 + $0x13a] sm:$0xff]  ;;  %v606_v12 = vmul.f32 %v2172_v6, %v2251_v14  ;;  %v1037_v13 = vmul.f32 %v2218_v51, %v2505_v33  ;;  %v2521_v62 = vld [vmem:[#allocation2 + $0x142] sm:$0xff] }
  0x5b   : > { %3339 = vst [vmem:[#allocation34_spill] sm:$0xff] %v2507_v50  ;;  %v2509_v56 = vld [vmem:[#allocation2 + $0x13c] sm:$0xff]  ;;  %v757_v27 = vadd.f32 %v725_v19, %v653_v49  ;;  %v2523_v48 = vld [vmem:[#allocation2 + $0x144] sm:$0xff]  ;;  %v710_v39 = vmul.f32 %v2201_v41, %v2259_v22  ;;  %v814_v3 = vmul.f32 %v2206_v42, %v2261_v23  ;;  %v1141_v34 = vmul.f32 %v2223_v52, %v2507_v50 }
  0x5c   : > { %3340 = vst [vmem:[#allocation35_spill] sm:$0xff] %v2509_v56  ;;  %v2519_v1 = vld [vmem:[#allocation2 + $0x140] sm:$0xff]  ;;  %3342 = vst [vmem:[#allocation37_spill] sm:$0xff] %v2523_v48  ;;  %1836 = vmatmul.mubr.msk.f32.gmra.mrb[2].mxu0 %vm196_vm0, %v1262_v9  ;;  %v964_v14 = vadd.f32 %v932_v28, %v860_v35  ;;  %v1245_v19 = vmul.f32 %v2228_v53, %v2509_v56  ;;  %v1142_v17 = vmul.f32 %v2223_v52, %v2521_v62 }
  0x5d   : > { %3341 = vst [vmem:[#allocation36_spill] sm:$0xff] %v2519_v1  ;;  %v1038_v18 = vmul.f32 %v2218_v51, %v2519_v1  ;;  %v861_v2 = vadd.f32 %v829_v44, %v757_v27  ;;  %v534_v22 = vadd.f32 %v502_v61, %v398_v8  ;;  %v399_v23 = vmul.f32 %v2162_v4, %v2277_v29  ;;  %v282_v54 = vld [vmem:[%s2157_s9 + $0xc0] sm:$0xff] }
  0x5e   : > { %v1069_v28 = vadd.f32 %v1037_v13, %v964_v14  ;;  %v1246_v26 = vmul.f32 %v2228_v53, %v2523_v48  ;;  %v918_v49 = vmul.f32 %v2211_v43, %v2263_v24  ;;  %v503_v9 = vmul.f32 %v2167_v5, %v2279_v30 }
  0x5f   : > { %v965_v44 = vadd.f32 %v933_v10, %v861_v2  ;;  %v638_v35 = vadd.f32 %v606_v12, %v534_v22  ;;  %v607_v8 = vmul.f32 %v2172_v6, %v2281_v31  ;;  %v711_v29 = vmul.f32 %v2201_v41, %v2290_v36 }
  0x60   : > { %v1173_v61 = vadd.f32 %v1141_v34, %v1069_v28  ;;  %v535_v27 = vadd.f32 %v503_v9, %v399_v23  ;;  %v314_v13 = vmax.f32 %v282_v54, 0.0  ;;  %v315_v14 = vmax.f32 %v283_v32, 0.0  ;;  %v2552_v46 = vld [vmem:[#allocation2 + $0x90] sm:$0xff]  ;;  %v2574_v22 = vld [vmem:[#allocation2 + $0x9a] sm:$0xff] }
  0x61   : > { %v1070_v16 = vadd.f32 %v1038_v18, %v965_v44  ;;  %v742_v40 = vadd.f32 %v710_v39, %v638_v35  ;;  %v2554_v24 = vld [vmem:[#allocation2 + $0x92] sm:$0xff]  ;;  %v414_v30 = vmul.f32 %v2162_v4, %v2318_v57  ;;  %v518_v31 = vmul.f32 %v2167_v5, %v2320_v58  ;;  %v2583_v28 = vld [vmem:[#allocation2 + $0x9c] sm:$0xff] }
  0x62   : > { %v2556_v48 = vld [vmem:[#allocation2 + $0x94] sm:$0xff]  ;;  %v1277_v10 = vadd.f32 %v1245_v19, %v1173_v61  ;;  %v1023_v12 = vmul.f32 %v2218_v51, %v2552_v46  ;;  %v815_v34 = vmul.f32 %v2206_v42, %v2292_v37  ;;  %v919_v39 = vmul.f32 %v2211_v43, %v2294_v38  ;;  %347 = vst.msk [vmem:[#allocation2 + $0x152] sm:$0xff] %vm196_vm0, %v314_v13 }
  0x63   : > { %3343 = vst [vmem:[#allocation38_spill] sm:$0xff] %v2556_v48  ;;  %v2568_v18 = vld [vmem:[#allocation2 + $0x98] sm:$0xff]  ;;  %348 = vst.msk [vmem:[#allocation2 + $0x15a] sm:$0xff] %vm196_vm0, %v315_v14  ;;  %v1174_v57 = vadd.f32 %v1142_v17, %v1070_v16  ;;  %v846_v2 = vadd.f32 %v814_v3, %v742_v40  ;;  %v1127_v58 = vmul.f32 %v2223_v52, %v2554_v24 }
  0x64   : > { %v639_v19 = vadd.f32 %v607_v8, %v535_v27  ;;  %1859 = vmatprep.mubr.msk.f32.mxu1 %vm196_vm0, %v1277_v10  ;;  %v1231_v23 = vmul.f32 %v2228_v53, %v2556_v48  ;;  %v1024_v54 = vmul.f32 %v2218_v51, %v2568_v18  ;;  %v550_v32 = vadd.f32 %v518_v31, %v414_v30  ;;  %v3344_v30 = vld [vmem:[#allocation10_spill] sm:$0xff] }
  0x65   : > { %v622_v16 = vmul.f32 %v2172_v6, %v2322_v59  ;;  %v1278_v40 = vadd.f32 %v1246_v26, %v1174_v57  ;;  %v950_v3 = vadd.f32 %v918_v49, %v846_v2  ;;  %v726_v9 = vmul.f32 %v2201_v41, %v2330_v63  ;;  %v268_v59 = vld [vmem:[%s2157_s9 + $0x50] sm:$0xff]  ;;  %v3345_v10 = vld [vmem:[#allocation14_spill] sm:$0xff] }
  0x66   : > { %v743_v17 = vadd.f32 %v711_v29, %v639_v19  ;;  %v1128_v44 = vmul.f32 %v2223_v52, %v2574_v22  ;;  %v830_v8 = vmul.f32 %v2206_v42, %v2332_v0  ;;  %v415_v61 = vmul.f32 %v2162_v4, %v2356_v20  ;;  %v269_v57 = vld [vmem:[%s2157_s9 + $0x58] sm:$0xff] }
  0x67   : > { %v654_v35 = vadd.f32 %v622_v16, %v550_v32  ;;  %1860 = vmatmul.mubr.msk.f32.gmra.mrb[2].mxu1 %vm196_vm0, %v1278_v40  ;;  %v1055_v26 = vadd.f32 %v1023_v12, %v950_v3  ;;  %v519_v29 = vmul.f32 %v2167_v5, %v2358_v21  ;;  %v623_v27 = vmul.f32 %v2172_v6, %v2360_v25  ;;  %v3348_v3 = vld [vmem:[#allocation15_spill] sm:$0xff] }
  0x68   : > { %v847_v49 = vadd.f32 %v815_v34, %v743_v17  ;;  %v1232_v13 = vmul.f32 %v2228_v53, %v2583_v28  ;;  %v934_v31 = vmul.f32 %v2211_v43, %v3344_v30  ;;  %v727_v20 = vmul.f32 %v2201_v41, %v3345_v10 }
  0x69   : > { %v758_v14 = vadd.f32 %v726_v9, %v654_v35  ;;  %v1159_v2 = vadd.f32 %v1127_v58, %v1055_v26  ;;  %v2606_v34 = vld [vmem:[#allocation2 + $0x150] sm:$0xff]  ;;  %v551_v25 = vadd.f32 %v519_v29, %v415_v61  ;;  %v300_v32 = vmax.f32 %v268_v59, 0.0  ;;  %v3349_v9 = vld [vmem:[#allocation18_spill] sm:$0xff] }
  0x6a   : > { %v951_v12 = vadd.f32 %v919_v39, %v847_v49  ;;  %v2608_v19 = vld [vmem:[#allocation2 + $0x152] sm:$0xff]  ;;  %v1039_v40 = vmul.f32 %v2218_v51, %v2606_v34  ;;  %v831_v17 = vmul.f32 %v2206_v42, %v3348_v3  ;;  %v935_v35 = vmul.f32 %v2211_v43, %v3349_v9  ;;  %v2622_v61 = vld [vmem:[#allocation2 + $0x15a] sm:$0xff] }
  0x6b   : > { %3346 = vst [vmem:[#allocation10_spill] sm:$0xff] %v2608_v19  ;;  %v2610_v21 = vld [vmem:[#allocation2 + $0x154] sm:$0xff]  ;;  %v862_v16 = vadd.f32 %v830_v8, %v758_v14  ;;  %v1263_v39 = vadd.f32 %v1231_v23, %v1159_v2  ;;  %v1143_v49 = vmul.f32 %v2223_v52, %v2608_v19  ;;  %v655_v10 = vadd.f32 %v623_v27, %v551_v25  ;;  %v2624_v8 = vld [vmem:[#allocation2 + $0x15c] sm:$0xff]  ;;  %v3353_v27 = vld [vmem:[#allocation16_spill] sm:$0xff] }
  0x6c   : > { %3347 = vst [vmem:[#allocation39_spill] sm:$0xff] %v2610_v21  ;;  %v2618_v58 = vld [vmem:[#allocation2 + $0x158] sm:$0xff]  ;;  %v1056_v26 = vadd.f32 %v1024_v54, %v951_v12  ;;  %3351 = vst [vmem:[#allocation41_spill] sm:$0xff] %v2622_v61  ;;  %v1247_v29 = vmul.f32 %v2228_v53, %v2610_v21  ;;  %v301_v23 = vmax.f32 %v269_v57, 0.0  ;;  %v400_v12 = vmul.f32 %v2162_v4, %v3353_v27  ;;  %v3354_v25 = vld [vmem:[#allocation17_spill] sm:$0xff] }
  0x6d   : > { %3350 = vst [vmem:[#allocation40_spill] sm:$0xff] %v2618_v58  ;;  %3352 = vst [vmem:[#allocation42_spill] sm:$0xff] %v2624_v8  ;;  %v966_v59 = vadd.f32 %v934_v31, %v862_v16  ;;  %v1040_v14 = vmul.f32 %v2218_v51, %v2618_v58  ;;  %1838 = vmatprep.mubr.msk.f32.mxu0 %vm196_vm0, %v1263_v39  ;;  %v759_v2 = vadd.f32 %v727_v20, %v655_v10  ;;  %v3355_v57 = vld [vmem:[#allocation19_spill] sm:$0xff]  ;;  %v3359_v21 = vld [vmem:[#allocation25_spill] sm:$0xff] }
  0x6e   : > { %333 = vst.msk [vmem:[#allocation2 + $0xaa] sm:$0xff] %vm196_vm0, %v300_v32  ;;  %v1160_v54 = vadd.f32 %v1128_v44, %v1056_v26  ;;  %v504_v9 = vmul.f32 %v2167_v5, %v3354_v25  ;;  %v1144_v31 = vmul.f32 %v2223_v52, %v2622_v61  ;;  %v1248_v16 = vmul.f32 %v2228_v53, %v2624_v8  ;;  %v3356_v26 = vld [vmem:[#allocation20_spill] sm:$0xff]  ;;  %v284_v25 = vld [vmem:[%s2157_s9 + $0xd0] sm:$0xff]  ;;  %v3358_v58 = vld [vmem:[#allocation23_spill] sm:$0xff] }
  0x6f   : > { %v1071_v32 = vadd.f32 %v1039_v40, %v966_v59  ;;  %334 = vst.msk [vmem:[#allocation2 + $0xb2] sm:$0xff] %vm196_vm0, %v301_v23  ;;  %v608_v44 = vmul.f32 %v2172_v6, %v3355_v57  ;;  %v863_v20 = vadd.f32 %v831_v17, %v759_v2  ;;  %v712_v27 = vmul.f32 %v2201_v41, %v3356_v26  ;;  %v3357_v59 = vld [vmem:[#allocation22_spill] sm:$0xff]  ;;  %v3360_v17 = vld [vmem:[#allocation21_spill] sm:$0xff] }
  0x70   : > { %v1264_v10 = vadd.f32 %v1232_v13, %v1160_v54  ;;  %v536_v39 = vadd.f32 %v504_v9, %v400_v12  ;;  %v401_v61 = vmul.f32 %v2162_v4, %v3357_v59  ;;  %v505_v8 = vmul.f32 %v2167_v5, %v3358_v58  ;;  %v3361_v54 = vld [vmem:[#allocation24_spill] sm:$0xff]  ;;  %v3362_v26 = vld [vmem:[#allocation26_spill] sm:$0xff] }
  0x71   : > { %v1175_v40 = vadd.f32 %v1143_v49, %v1071_v32  ;;  %v609_v23 = vmul.f32 %v2172_v6, %v3359_v21  ;;  %v967_v57 = vadd.f32 %v935_v35, %v863_v20  ;;  %v816_v9 = vmul.f32 %v2206_v42, %v3360_v17  ;;  %v285_v49 = vld [vmem:[%s2157_s9 + $0xd8] sm:$0xff]  ;;  %v3363_v35 = vld [vmem:[#allocation27_spill] sm:$0xff] }
  0x72   : > { %1839 = vmatmul.mubr.msk.f32.gmra.mrb[4].mxu0 %vm196_vm0, %v1264_v10  ;;  %v640_v13 = vadd.f32 %v608_v44, %v536_v39  ;;  %v920_v2 = vmul.f32 %v2211_v43, %v3361_v54  ;;  %v537_v59 = vadd.f32 %v505_v8, %v401_v61  ;;  %v713_v58 = vmul.f32 %v2201_v41, %v3362_v26 }
  0x73   : > { %v1279_v12 = vadd.f32 %v1247_v29, %v1175_v40  ;;  %v316_v19 = vmax.f32 %v284_v25, 0.0  ;;  %v1072_v21 = vadd.f32 %v1040_v14, %v967_v57  ;;  %v817_v44 = vmul.f32 %v2206_v42, %v3363_v35 }
  0x74   : > { %v744_v3 = vadd.f32 %v712_v27, %v640_v13  ;;  %v921_v20 = vmul.f32 %v2211_v43, %v2445_v11  ;;  %v641_v29 = vadd.f32 %v609_v23, %v537_v59  ;;  %v317_v39 = vmax.f32 %v285_v49, 0.0 }
  0x75   : > { %v2658_v32 = vld [vmem:[#allocation2 + $0xa8] sm:$0xff]  ;;  %1862 = vmatprep.mubr.msk.f32.mxu1 %vm196_vm0, %v1279_v12  ;;  %349 = vst.msk [vmem:[#allocation2 + $0x16a] sm:$0xff] %vm196_vm0, %v316_v19  ;;  %v416_v61 = vmul.f32 %v2162_v4, %v2449_v7  ;;  %v520_v8 = vmul.f32 %v2167_v5, %v2454_v15  ;;  %v1176_v14 = vadd.f32 %v1144_v31, %v1072_v21 }
  0x76   : > { %v2662_v10 = vld [vmem:[#allocation2 + $0xaa] sm:$0xff]  ;;  %v848_v27 = vadd.f32 %v816_v9, %v744_v3  ;;  %v1025_v25 = vmul.f32 %v2218_v51, %v2658_v32  ;;  %v2680_v13 = vld [vmem:[#allocation2 + $0xb2] sm:$0xff]  ;;  %v624_v19 = vmul.f32 %v2172_v6, %v2473_v55  ;;  %v745_v31 = vadd.f32 %v713_v58, %v641_v29  ;;  %350 = vst.msk [vmem:[#allocation2 + $0x172] sm:$0xff] %vm196_vm0, %v317_v39  ;;  %v363_v39 = vld [vmem:[#allocation2 + $0x60] sm:$0xff] }
  0x77   : > { %v2676_v40 = vld [vmem:[#allocation2 + $0xac] sm:$0xff]  ;;  %v1129_v7 = vmul.f32 %v2223_v52, %v2662_v10  ;;  %v728_v3 = vmul.f32 %v2201_v41, %v2505_v33  ;;  %v1280_v23 = vadd.f32 %v1248_v16, %v1176_v14  ;;  %v2693_v12 = vld [vmem:[#allocation2 + $0xb4] sm:$0xff]  ;;  %v552_v55 = vadd.f32 %v520_v8, %v416_v61  ;;  %v466_v61 = vld [vmem:[#allocation2 + $0x62] sm:$0xff] }
  0x78   : > { %v2678_v57 = vld [vmem:[#allocation2 + $0xb0] sm:$0xff]  ;;  %v1233_v15 = vmul.f32 %v2228_v53, %v2676_v40  ;;  %v952_v9 = vadd.f32 %v920_v2, %v848_v27  ;;  %3364 = vst [vmem:[#allocation16_spill] sm:$0xff] %v2693_v12  ;;  %v849_v59 = vadd.f32 %v817_v44, %v745_v31  ;;  %v1130_v21 = vmul.f32 %v2223_v52, %v2680_v13 }
  0x79   : > { %v1026_v49 = vmul.f32 %v2218_v51, %v2678_v57  ;;  %v832_v58 = vmul.f32 %v2206_v42, %v2507_v50  ;;  %v417_v29 = vmul.f32 %v2162_v4, %v2475_v45  ;;  %1863 = vmatmul.mubr.msk.f32.gmra.mrb[4].mxu1 %vm196_vm0, %v1280_v23  ;;  %v656_v2 = vadd.f32 %v624_v19, %v552_v55  ;;  %v570_v23 = vld [vmem:[#allocation2 + $0x64] sm:$0xff] }
  0x7a   : > { %v1057_v16 = vadd.f32 %v1025_v25, %v952_v9  ;;  %v521_v14 = vmul.f32 %v2167_v5, %v2489_v60  ;;  %v625_v44 = vmul.f32 %v2172_v6, %v2495_v47  ;;  %v953_v8 = vadd.f32 %v921_v20, %v849_v59 }
  0x7b   : > { %v1234_v27 = vmul.f32 %v2228_v53, %v2693_v12  ;;  %v936_v31 = vmul.f32 %v2211_v43, %v2509_v56  ;;  %v729_v45 = vmul.f32 %v2201_v41, %v2519_v1  ;;  %v760_v19 = vadd.f32 %v728_v3, %v656_v2 }
  0x7c   : > { %v1161_v25 = vadd.f32 %v1129_v7, %v1057_v16  ;;  %v2712_v9 = vld [vmem:[#allocation2 + $0x168] sm:$0xff]  ;;  %v553_v55 = vadd.f32 %v521_v14, %v417_v29  ;;  %v402_v47 = vmul.f32 %v2162_v4, %v363_v39  ;;  %v1058_v20 = vadd.f32 %v1026_v49, %v953_v8  ;;  %v3366_v14 = vld [vmem:[#allocation37_spill] sm:$0xff] }
  0x7d   : > { %v2714_v60 = vld [vmem:[#allocation2 + $0x16a] sm:$0xff]  ;;  %v1041_v59 = vmul.f32 %v2218_v51, %v2712_v9  ;;  %v833_v12 = vmul.f32 %v2206_v42, %v2521_v62  ;;  %v506_v56 = vmul.f32 %v2167_v5, %v466_v61  ;;  %v864_v50 = vadd.f32 %v832_v58, %v760_v19  ;;  %v2726_v2 = vld [vmem:[#allocation2 + $0x172] sm:$0xff] }
  0x7e   : > { %v1265_v1 = vadd.f32 %v1233_v15, %v1161_v25  ;;  %v2722_v7 = vld [vmem:[#allocation2 + $0x16c] sm:$0xff]  ;;  %v657_v3 = vadd.f32 %v625_v44, %v553_v55  ;;  %3365 = vst [vmem:[#allocation17_spill] sm:$0xff] %v2726_v2  ;;  %v610_v29 = vmul.f32 %v2172_v6, %v570_v23  ;;  %v1162_v49 = vadd.f32 %v1130_v21, %v1058_v20  ;;  %v2736_v61 = vld [vmem:[#allocation2 + $0x174] sm:$0xff] }
  0x7f   : > { %v2724_v16 = vld [vmem:[#allocation2 + $0x170] sm:$0xff]  ;;  %v1145_v39 = vmul.f32 %v2223_v52, %v2714_v60  ;;  %v937_v8 = vmul.f32 %v2211_v43, %v3366_v14  ;;  %v968_v15 = vadd.f32 %v936_v31, %v864_v50  ;;  %v1249_v58 = vmul.f32 %v2228_v53, %v2722_v7  ;;  %3367 = vst [vmem:[#allocation19_spill] sm:$0xff] %v2736_v61 }
  0x80   : > { %1841 = vmatprep.mubr.msk.f32.mxu0 %vm196_vm0, %v1265_v1  ;;  %v761_v44 = vadd.f32 %v729_v45, %v657_v3  ;;  %v538_v25 = vadd.f32 %v506_v56, %v402_v47  ;;  %v1266_v19 = vadd.f32 %v1234_v27, %v1162_v49  ;;  %v1042_v21 = vmul.f32 %v2218_v51, %v2724_v16  ;;  %v286_v49 = vld [vmem:[%s2157_s9 + $0xe0] sm:$0xff] }
  0x81   : > { %v1146_v23 = vmul.f32 %v2223_v52, %v2726_v2  ;;  %v714_v55 = vmul.f32 %v2201_v41, %v2552_v46  ;;  %v1073_v1 = vadd.f32 %v1041_v59, %v968_v15  ;;  %v818_v45 = vmul.f32 %v2206_v42, %v2554_v24  ;;  %v3368_v15 = vld [vmem:[#allocation7_spill] sm:$0xff]  ;;  %v287_v2 = vld [vmem:[%s2157_s9 + $0xe8] sm:$0xff] }
  0x82   : > { %v865_v50 = vadd.f32 %v833_v12, %v761_v44  ;;  %v642_v31 = vadd.f32 %v610_v29, %v538_v25  ;;  %1842 = vmatmul.mubr.msk.f32.gmra.mrb[6].mxu0 %vm196_vm0, %v1266_v19  ;;  %v1250_v56 = vmul.f32 %v2228_v53, %v2736_v61  ;;  %v922_v27 = vmul.f32 %v2211_v43, %v2556_v48  ;;  %v3369_v25 = vld [vmem:[#allocation8_spill] sm:$0xff] }
  0x83   : > { %v403_v47 = vmul.f32 %v2162_v4, %v2290_v36  ;;  %v507_v20 = vmul.f32 %v2167_v5, %v2292_v37  ;;  %v1177_v12 = vadd.f32 %v1145_v39, %v1073_v1  ;;  %v611_v29 = vmul.f32 %v2172_v6, %v2294_v38 }
  0x84   : > { %v969_v59 = vadd.f32 %v937_v8, %v865_v50  ;;  %v746_v3 = vadd.f32 %v714_v55, %v642_v31  ;;  %v1027_v44 = vmul.f32 %v2218_v51, %v3368_v15  ;;  %v1131_v19 = vmul.f32 %v2223_v52, %v3369_v25  ;;  %v3370_v8 = vld [vmem:[#allocation9_spill] sm:$0xff] }
  0x85   : > { %v539_v61 = vadd.f32 %v507_v20, %v403_v47  ;;  %v715_v36 = vmul.f32 %v2201_v41, %v2568_v18  ;;  %v1281_v48 = vadd.f32 %v1249_v58, %v1177_v12  ;;  %v1235_v55 = vmul.f32 %v2228_v53, %v3370_v8  ;;  %v3377_v8 = vld [vmem:[#allocation18_spill] sm:$0xff] }
  0x86   : > { %v1074_v37 = vadd.f32 %v1042_v21, %v969_v59  ;;  %v850_v39 = vadd.f32 %v818_v45, %v746_v3  ;;  %v819_v38 = vmul.f32 %v2206_v42, %v2574_v22  ;;  %v923_v50 = vmul.f32 %v2211_v43, %v2583_v28  ;;  %v3371_v45 = vld [vmem:[#allocation11_spill] sm:$0xff] }
  0x87   : > { %v643_v1 = vadd.f32 %v611_v29, %v539_v61  ;;  %v318_v31 = vmax.f32 %v286_v49, 0.0  ;;  %1865 = vmatprep.mubr.msk.f32.mxu1 %vm196_vm0, %v1281_v48  ;;  %v319_v15 = vmax.f32 %v287_v2, 0.0  ;;  %v418_v58 = vmul.f32 %v2162_v4, %v2330_v63  ;;  %v2789_v29 = vld [vmem:[%s3244_s0] ss:$0 sm:$0xff] }
  0x88   : > { %v1178_v47 = vadd.f32 %v1146_v23, %v1074_v37  ;;  %v954_v20 = vadd.f32 %v922_v27, %v850_v39  ;;  %v1028_v12 = vmul.f32 %v2218_v51, %v3371_v45  ;;  %v522_v61 = vmul.f32 %v2167_v5, %v2332_v0  ;;  %v3372_v23 = vld [vmem:[#allocation12_spill] sm:$0xff]  ;;  %v3373_v5 = vld [vmem:[#allocation14_spill] sm:$0xff]  ;;  %v2796_v0 = vld [vmem:[%s3244_s0 + $0x1] ss:$0 sm:$0xff] }
  0x89   : > { %v747_v21 = vadd.f32 %v715_v36, %v643_v1  ;;  %351 = vst.msk [vmem:[#allocation2 + $0x182] sm:$0xff] %vm196_vm0, %v318_v31  ;;  %v626_v59 = vmul.f32 %v2172_v6, %v3344_v30  ;;  %v1132_v2 = vmul.f32 %v2223_v52, %v3372_v23  ;;  %352 = vst.msk [vmem:[#allocation2 + $0x18a] sm:$0xff] %vm196_vm0, %v319_v15  ;;  %v3374_v30 = vld [vmem:[#allocation15_spill] sm:$0xff]  ;;  %v3376_v36 = vld [vmem:[#allocation10_spill] sm:$0xff] }
  0x8a   : > { %v1282_v3 = vadd.f32 %v1250_v56, %v1178_v47  ;;  %v1059_v48 = vadd.f32 %v1027_v44, %v954_v20  ;;  %v730_v4 = vmul.f32 %v2201_v41, %v2606_v34  ;;  %v554_v27 = vadd.f32 %v522_v61, %v418_v58  ;;  %v3375_v44 = vld [vmem:[#allocation13_spill] sm:$0xff]  ;;  %v2808_v39 = vld [vmem:[%s3244_s0 + $0x2] ss:$0 sm:$0xff]  ;;  %v3379_v58 = vld [vmem:[#allocation40_spill] sm:$0xff] }
  0x8b   : > { %v851_v63 = vadd.f32 %v819_v38, %v747_v21  ;;  %v419_v6 = vmul.f32 %v2789_v29, %v3373_v5  ;;  %v523_v56 = vmul.f32 %v2796_v0, %v3374_v30  ;;  %v1236_v25 = vmul.f32 %v2228_v53, %v3375_v44  ;;  %v3378_v47 = vld [vmem:[#allocation39_spill] sm:$0xff]  ;;  %v3380_v45 = vld [vmem:[#allocation20_spill] sm:$0xff] }
  0x8c   : > { %1866 = vmatmul.mubr.msk.f32.gmra.mrb[6].mxu1 %vm196_vm0, %v1282_v3  ;;  %v1163_v49 = vadd.f32 %v1131_v19, %v1059_v48  ;;  %v834_v37 = vmul.f32 %v2206_v42, %v3376_v36  ;;  %v627_v1 = vmul.f32 %v2808_v39, %v3377_v8  ;;  %v658_v31 = vadd.f32 %v626_v59, %v554_v27 }
  0x8d   : > { %v955_v38 = vadd.f32 %v923_v50, %v851_v63  ;;  %v938_v20 = vmul.f32 %v2211_v43, %v3378_v47  ;;  %v555_v19 = vadd.f32 %v523_v56, %v419_v6  ;;  %v731_v21 = vmul.f32 %v2201_v41, %v3379_v58  ;;  %v3381_v63 = vld [vmem:[#allocation41_spill] sm:$0xff]  ;;  %v3382_v6 = vld [vmem:[#allocation42_spill] sm:$0xff] }
  0x8e   : > { %v1267_v15 = vadd.f32 %v1235_v55, %v1163_v49  ;;  %v404_v61 = vmul.f32 %v2789_v29, %v3380_v45  ;;  %v508_v3 = vmul.f32 %v2796_v0, %v3360_v17  ;;  %v762_v23 = vadd.f32 %v730_v4, %v658_v31  ;;  %v3383_v31 = vld [vmem:[#allocation28_spill] sm:$0xff] }
  0x8f   : > { %v1060_v48 = vadd.f32 %v1028_v12, %v955_v38  ;;  %v659_v5 = vadd.f32 %v627_v1, %v555_v19  ;;  %v612_v50 = vmul.f32 %v2808_v39, %v3361_v54  ;;  %v835_v27 = vmul.f32 %v2206_v42, %v3381_v63 }
  0x90   : > { %1844 = vmatprep.mubr.msk.f32.mxu0 %vm196_vm0, %v1267_v15  ;;  %v2823_v59 = vld [vmem:[#allocation2 + $0x180] sm:$0xff]  ;;  %v939_v30 = vmul.f32 %v2211_v43, %v3382_v6  ;;  %v540_v56 = vadd.f32 %v508_v3, %v404_v61  ;;  %v866_v12 = vadd.f32 %v834_v37, %v762_v23  ;;  %v2835_v54 = vld [vmem:[#allocation2 + $0x188] sm:$0xff]  ;;  %v716_v44 = vmul.f32 %v2201_v41, %v2658_v32  ;;  %v288_v23 = vld [vmem:[%s2157_s9 + $0xf0] sm:$0xff] }
  0x91   : > { %v2825_v55 = vld [vmem:[#allocation2 + $0x182] sm:$0xff]  ;;  %v1164_v17 = vadd.f32 %v1132_v2, %v1060_v48  ;;  %v1043_v4 = vmul.f32 %v2218_v51, %v2823_v59  ;;  %v763_v8 = vadd.f32 %v731_v21, %v659_v5  ;;  %v820_v1 = vmul.f32 %v2206_v42, %v2662_v10  ;;  %v2847_v45 = vld [vmem:[#allocation2 + $0x18a] sm:$0xff] }
  0x92   : > { %v2833_v49 = vld [vmem:[#allocation2 + $0x184] sm:$0xff]  ;;  %v924_v38 = vmul.f32 %v2211_v43, %v2676_v40  ;;  %v1029_v2 = vmul.f32 %v2218_v51, %v3383_v31  ;;  %v970_v19 = vadd.f32 %v938_v20, %v866_v12  ;;  %v1147_v15 = vmul.f32 %v2223_v52, %v2825_v55  ;;  %v2849_v61 = vld [vmem:[#allocation2 + $0x18c] sm:$0xff]  ;;  %v2883_v12 = vld [vmem:[%s3244_s0 + $0x3] ss:$0 sm:$0xff] }
  0x93   : > { %v1268_v37 = vadd.f32 %v1236_v25, %v1164_v17  ;;  %v644_v41 = vadd.f32 %v612_v50, %v540_v56  ;;  %v1251_v42 = vmul.f32 %v2228_v53, %v2833_v49  ;;  %v867_v21 = vadd.f32 %v835_v27, %v763_v8  ;;  %v2866_v5 = vld [vmem:[%s3244_s0 + $0x7] ss:$0 sm:$0xff]  ;;  %v3384_v50 = vld [vmem:[#allocation29_spill] sm:$0xff]  ;;  %v289_v27 = vld [vmem:[%s2157_s9 + $0xf8] sm:$0xff]  ;;  %s1943_s9 = scalar_lea.vmem %s1942_s8, 8192 }
  0x94   : > { %v1044_v43 = vmul.f32 %v2218_v51, %v2835_v54  ;;  %v405_v25 = vmul.f32 %v2789_v29, %v3362_v26  ;;  %v1075_v20 = vadd.f32 %v1043_v4, %v970_v19  ;;  %v509_v3 = vmul.f32 %v2796_v0, %v3363_v35  ;;  %v2873_v26 = vld [vmem:[%s3244_s0 + $0x8] ss:$0 sm:$0xff]  ;;  %v3385_v8 = vld [vmem:[#allocation30_spill] sm:$0xff]  ;;  %p1945_p1 = scmp.lt.s32.totalorder %s1943_s9, %s1937_s6 }
  0x95   : > { %1845 = vmatmul.mubr.msk.f32.gmra.mrb[8].mxu0 %vm196_vm0, %v1268_v37  ;;  %v748_v52 = vadd.f32 %v716_v44, %v644_v41  ;;  %v613_v48 = vmul.f32 %v2808_v39, %v2445_v11  ;;  %v971_v53 = vadd.f32 %v939_v30, %v867_v21  ;;  %v1148_v51 = vmul.f32 %v2866_v5, %v2847_v45  ;;  %v2892_v37 = vld [vmem:[%s3244_s0 + $0x4] ss:$0 sm:$0xff] }
  0x96   : > { %v1252_v35 = vmul.f32 %v2873_v26, %v2849_v61  ;;  %v1133_v11 = vmul.f32 %v2866_v5, %v3384_v50  ;;  %v1179_v30 = vadd.f32 %v1147_v15, %v1075_v20  ;;  %v541_v17 = vadd.f32 %v509_v3, %v405_v25  ;;  %p1946_p2 = por %p1945_p1, %p1944_p0 }
  0x97   : > { %v852_v56 = vadd.f32 %v820_v1, %v748_v52  ;;  %v717_v4 = vmul.f32 %v2883_v12, %v2678_v57  ;;  %v1076_v44 = vadd.f32 %v1044_v43, %v971_v53  ;;  %v1237_v31 = vmul.f32 %v2873_v26, %v3385_v8  ;;  %v3386_v52 = vld [vmem:[#allocation34_spill] sm:$0xff]  ;;  %v3387_v53 = vld [vmem:[#allocation35_spill] sm:$0xff] }
  0x98   : > { %v821_v1 = vmul.f32 %v2892_v37, %v2680_v13  ;;  %v320_v19 = vmax.f32 %v288_v23, 0.0  ;;  %v1283_v15 = vadd.f32 %v1251_v42, %v1179_v30  ;;  %v645_v21 = vadd.f32 %v613_v48, %v541_v17  ;;  %v3388_v42 = vld [vmem:[#allocation16_spill] sm:$0xff]  ;;  %p1947_p3 = pnand %p1946_p2, %p1940_p13 }
  0x99   : > { %v956_v41 = vadd.f32 %v924_v38, %v852_v56  ;;  %v321_v25 = vmax.f32 %v289_v27, 0.0  ;;  %v1180_v20 = vadd.f32 %v1148_v51, %v1076_v44  ;;  %v420_v43 = vmul.f32 %v2789_v29, %v2505_v33  ;;  %v2907_v38 = vld [vmem:[%s3244_s0 + $0x5] ss:$0 sm:$0xff]  ;;  %v2914_v33 = vld [vmem:[%s3244_s0 + $0x6] ss:$0 sm:$0xff]  ;;  %v3390_v17 = vld [vmem:[#allocation36_spill] sm:$0xff] }
  0x9a   : > { %353 = vst.msk [vmem:[#allocation2 + $0x19a] sm:$0xff] %vm196_vm0, %v320_v19  ;;  %v524_v3 = vmul.f32 %v2796_v0, %v3386_v52  ;;  %v628_v50 = vmul.f32 %v2808_v39, %v3387_v53  ;;  %1868 = vmatprep.mubr.msk.f32.mxu1 %vm196_vm0, %v1283_v15  ;;  %v749_v23 = vadd.f32 %v717_v4, %v645_v21  ;;  %v3389_v51 = vld [vmem:[#allocation31_spill] sm:$0xff]  ;;  %v3391_v21 = vld [vmem:[#allocation32_spill] sm:$0xff] }
  0x9b   : > { %v1061_v8 = vadd.f32 %v1029_v2, %v956_v41  ;;  %v925_v48 = vmul.f32 %v2907_v38, %v3388_v42  ;;  %v1030_v27 = vmul.f32 %v2914_v33, %v3389_v51  ;;  %354 = vst.msk [vmem:[#allocation2 + $0x1a2] sm:$0xff] %vm196_vm0, %v321_v25  ;;  %v1284_v2 = vadd.f32 %v1252_v35, %v1180_v20 }
  0x9c   : > { %v556_v30 = vadd.f32 %v524_v3, %v420_v43  ;;  %v732_v56 = vmul.f32 %v2883_v12, %v2712_v9  ;;  %v421_v4 = vmul.f32 %v2789_v29, %v3390_v17  ;;  %v853_v19 = vadd.f32 %v821_v1, %v749_v23  ;;  %v678_v3 = vld [vmem:[#allocation2 + $0xc0] sm:$0xff] }
  0x9d   : > { %v1165_v44 = vadd.f32 %v1133_v11, %v1061_v8  ;;  %v525_v15 = vmul.f32 %v2796_v0, %v2521_v62  ;;  %v629_v41 = vmul.f32 %v2808_v39, %v3366_v14  ;;  %1869 = vmatmul.mubr.msk.f32.gmra.mrb[8].mxu1 %vm196_vm0, %v1284_v2  ;;  %v1134_v35 = vmul.f32 %v2866_v5, %v3391_v21  ;;  %v3392_v8 = vld [vmem:[#allocation38_spill] sm:$0xff]  ;;  %v886_v21 = vld [vmem:[#allocation2 + $0xc4] sm:$0xff] }
  0x9e   : > { %v660_v25 = vadd.f32 %v628_v50, %v556_v30  ;;  %v836_v20 = vmul.f32 %v2892_v37, %v2714_v60  ;;  %v733_v43 = vmul.f32 %v2883_v12, %v2724_v16  ;;  %v957_v1 = vadd.f32 %v925_v48, %v853_v19 }
  0x9f   : > { %v1269_v11 = vadd.f32 %v1237_v31, %v1165_v44  ;;  %v557_v52 = vadd.f32 %v525_v15, %v421_v4  ;;  %v406_v62 = vmul.f32 %v2789_v29, %v2552_v46  ;;  %v940_v53 = vmul.f32 %v2907_v38, %v2722_v7  ;;  %v3393_v31 = vld [vmem:[#allocation33_spill] sm:$0xff]  ;;  %v782_v4 = vld [vmem:[#allocation2 + $0xc2] sm:$0xff] }
  0xa0   : > { %v764_v14 = vadd.f32 %v732_v56, %v660_v25  ;;  %v510_v50 = vmul.f32 %v2796_v0, %v2554_v24  ;;  %v614_v23 = vmul.f32 %v2808_v39, %v3392_v8  ;;  %v1062_v51 = vadd.f32 %v1030_v27, %v957_v1  ;;  %v3394_v56 = vld [vmem:[#allocation17_spill] sm:$0xff]  ;;  %v3396_v8 = vld [vmem:[#allocation19_spill] sm:$0xff] }
  0xa1   : > { %1847 = vmatprep.mubr.msk.f32.mxu0 %vm196_vm0, %v1269_v11  ;;  %v1238_v48 = vmul.f32 %v2873_v26, %v3393_v31  ;;  %v2945_v2 = vld [vmem:[#allocation2 + $0x198] sm:$0xff]  ;;  %v661_v30 = vadd.f32 %v629_v41, %v557_v52  ;;  %v837_v17 = vmul.f32 %v2892_v37, %v3394_v56  ;;  %v718_v27 = vmul.f32 %v2883_v12, %v678_v3 }
  0xa2   : > { %v2947_v46 = vld [vmem:[#allocation2 + $0x19a] sm:$0xff]  ;;  %v868_v44 = vadd.f32 %v836_v20, %v764_v14  ;;  %v1045_v24 = vmul.f32 %v2914_v33, %v2945_v2  ;;  %v542_v15 = vadd.f32 %v510_v50, %v406_v62  ;;  %v1166_v25 = vadd.f32 %v1134_v35, %v1062_v51  ;;  %v2962_v14 = vld [vmem:[#allocation2 + $0x1a2] sm:$0xff]  ;;  %v991_v51 = vld [vmem:[#allocation2 + $0xf0] sm:$0xff] }
  0xa3   : > { %v2953_v19 = vld [vmem:[#allocation2 + $0x1a0] sm:$0xff]  ;;  %v765_v1 = vadd.f32 %v733_v43, %v661_v30  ;;  %v941_v41 = vmul.f32 %v2907_v38, %v3396_v8  ;;  %v1149_v20 = vmul.f32 %v2866_v5, %v2947_v46  ;;  %3397 = vst [vmem:[#allocation23_spill] sm:$0xff] %v2962_v14  ;;  %v822_v56 = vmul.f32 %v2892_v37, %v782_v4  ;;  %v1095_v8 = vld [vmem:[#allocation2 + $0xf2] sm:$0xff]  ;;  %v679_v4 = vld [vmem:[#allocation2 + $0xc8] sm:$0xff] }
  0xa4   : > { %3395 = vst [vmem:[#allocation22_spill] sm:$0xff] %v2953_v19  ;;  %v2956_v11 = vld [vmem:[#allocation2 + $0x19c] sm:$0xff]  ;;  %v972_v52 = vadd.f32 %v940_v53, %v868_v44  ;;  %v646_v31 = vadd.f32 %v614_v23, %v542_v15  ;;  %v1270_v62 = vadd.f32 %v1238_v48, %v1166_v25  ;;  %v1046_v35 = vmul.f32 %v2914_v33, %v2953_v19  ;;  %v2967_v3 = vld [vmem:[#allocation2 + $0x1a4] sm:$0xff] }
  0xa5   : > { %v869_v50 = vadd.f32 %v837_v17, %v765_v1  ;;  %3398 = vst [vmem:[#allocation25_spill] sm:$0xff] %v2967_v3  ;;  %v926_v43 = vmul.f32 %v2907_v38, %v886_v21  ;;  %v1253_v53 = vmul.f32 %v2873_v26, %v2956_v11  ;;  %v407_v23 = vmul.f32 %v2789_v29, %v2568_v18  ;;  %v783_v21 = vld [vmem:[#allocation2 + $0xca] sm:$0xff] }
  0xa6   : > { %v1077_v30 = vadd.f32 %v1045_v24, %v972_v52  ;;  %v750_v44 = vadd.f32 %v718_v27, %v646_v31  ;;  %1848 = vmatmul.mubr.msk.f32.gmra.mrb[10].mxu0 %vm196_vm0, %v1270_v62  ;;  %v1150_v17 = vmul.f32 %v2866_v5, %v2962_v14  ;;  %v511_v15 = vmul.f32 %v2796_v0, %v2574_v22  ;;  %v1199_v31 = vld [vmem:[#allocation2 + $0xf4] sm:$0xff]  ;;  %v887_v14 = vld [vmem:[#allocation2 + $0xcc] sm:$0xff] }
  0xa7   : > { %v973_v48 = vadd.f32 %v941_v41, %v869_v50  ;;  %v615_v24 = vmul.f32 %v2808_v39, %v2583_v28  ;;  %v1254_v27 = vmul.f32 %v2873_v26, %v2967_v3  ;;  %v1031_v18 = vmul.f32 %v2914_v33, %v991_v51 }
  0xa8   : > { %v1181_v25 = vadd.f32 %v1149_v20, %v1077_v30  ;;  %v854_v1 = vadd.f32 %v822_v56, %v750_v44  ;;  %v1135_v41 = vmul.f32 %v2866_v5, %v1095_v8  ;;  %v543_v62 = vadd.f32 %v511_v15, %v407_v23  ;;  %v992_v56 = vld [vmem:[#allocation2 + $0xf8] sm:$0xff] }
  0xa9   : > { %v1078_v52 = vadd.f32 %v1046_v35, %v973_v48  ;;  %v719_v50 = vmul.f32 %v2883_v12, %v679_v4  ;;  %v823_v28 = vmul.f32 %v2892_v37, %v783_v21  ;;  %v422_v20 = vmul.f32 %v2789_v29, %v2606_v34  ;;  %v1096_v4 = vld [vmem:[#allocation2 + $0xfa] sm:$0xff] }
  0xaa   : > { %v1285_v22 = vadd.f32 %v1253_v53, %v1181_v25  ;;  %v958_v19 = vadd.f32 %v926_v43, %v854_v1  ;;  %v647_v3 = vadd.f32 %v615_v24, %v543_v62  ;;  %v526_v35 = vmul.f32 %v2796_v0, %v3376_v36  ;;  %v1200_v34 = vld [vmem:[#allocation2 + $0xfc] sm:$0xff] }
  0xab   : > { %v1182_v30 = vadd.f32 %v1150_v17, %v1078_v52  ;;  %v630_v8 = vmul.f32 %v2808_v39, %v3378_v47  ;;  %v1239_v53 = vmul.f32 %v2873_v26, %v1199_v31  ;;  %v927_v43 = vmul.f32 %v2907_v38, %v887_v14  ;;  %v1111_v52 = vld [vmem:[#allocation2 + $0x1b2] sm:$0xff] }
  0xac   : > { %1871 = vmatprep.mubr.msk.f32.mxu1 %vm196_vm0, %v1285_v22  ;;  %v1063_v51 = vadd.f32 %v1031_v18, %v958_v19  ;;  %v751_v23 = vadd.f32 %v719_v50, %v647_v3  ;;  %v558_v48 = vadd.f32 %v526_v35, %v422_v20  ;;  %v734_v17 = vmul.f32 %v2883_v12, %v2823_v59  ;;  %v1007_v3 = vld [vmem:[#allocation2 + $0x1b0] sm:$0xff]  ;;  %v784_v35 = vld [vmem:[#allocation2 + $0xda] sm:$0xff] }
  0xad   : > { %v1286_v44 = vadd.f32 %v1254_v27, %v1182_v30  ;;  %v1032_v36 = vmul.f32 %v2914_v33, %v992_v56  ;;  %v838_v47 = vmul.f32 %v2892_v37, %v2825_v55  ;;  %v423_v19 = vmul.f32 %v2789_v29, %v3379_v58  ;;  %v1008_v56 = vld [vmem:[#allocation2 + $0x1b8] sm:$0xff] }
  0xae   : > { %v1167_v15 = vadd.f32 %v1135_v41, %v1063_v51  ;;  %v855_v14 = vadd.f32 %v823_v28, %v751_v23  ;;  %v662_v24 = vadd.f32 %v630_v8, %v558_v48  ;;  %v527_v21 = vmul.f32 %v2796_v0, %v3381_v63  ;;  %v1215_v41 = vld [vmem:[#allocation2 + $0x1b4] sm:$0xff] }
  0xaf   : > { %1872 = vmatmul.mubr.msk.f32.gmra.mrb[10].mxu1 %vm196_vm0, %v1286_v44  ;;  %v631_v59 = vmul.f32 %v2808_v39, %v3382_v6  ;;  %v1136_v27 = vmul.f32 %v2866_v5, %v1096_v4  ;;  %v1240_v1 = vmul.f32 %v2873_v26, %v1200_v34  ;;  %v942_v55 = vmul.f32 %v2907_v38, %v2833_v49  ;;  %v680_v63 = vld [vmem:[#allocation2 + $0xd8] sm:$0xff] }
  0xb0   : > { %v1271_v25 = vadd.f32 %v1239_v53, %v1167_v15  ;;  %v959_v58 = vadd.f32 %v927_v43, %v855_v14  ;;  %v766_v18 = vadd.f32 %v734_v17, %v662_v24  ;;  %v559_v31 = vadd.f32 %v527_v21, %v423_v19  ;;  %v1112_v23 = vld [vmem:[#allocation2 + $0x1ba] sm:$0xff]  ;;  %v993_v24 = vld [vmem:[#allocation2 + $0x108] sm:$0xff] }
  0xb1   : > { %v735_v62 = vmul.f32 %v2883_v12, %v2835_v54  ;;  %v1047_v6 = vmul.f32 %v2914_v33, %v1007_v3  ;;  %v839_v50 = vmul.f32 %v2892_v37, %v2847_v45  ;;  %v408_v22 = vmul.f32 %v2789_v29, %v2658_v32  ;;  %v888_v4 = vld [vmem:[#allocation2 + $0xdc] sm:$0xff] }
  0xb2   : > { %1850 = vmatprep.mubr.msk.f32.mxu0 %vm196_vm0, %v1271_v25  ;;  %v512_v49 = vmul.f32 %v2796_v0, %v2662_v10  ;;  %v1064_v28 = vadd.f32 %v1032_v36, %v959_v58  ;;  %v870_v20 = vadd.f32 %v838_v47, %v766_v18  ;;  %v663_v30 = vadd.f32 %v631_v59, %v559_v31  ;;  %v681_v15 = vld [vmem:[#allocation2 + $0xe0] sm:$0xff]  ;;  %v1201_v31 = vld [vmem:[#allocation2 + $0x10c] sm:$0xff] }
  0xb3   : > { %v616_v54 = vmul.f32 %v2808_v39, %v2676_v40  ;;  %v1151_v8 = vmul.f32 %v2866_v5, %v1111_v52  ;;  %v1255_v51 = vmul.f32 %v2873_v26, %v1215_v41  ;;  %v720_v45 = vmul.f32 %v2883_v12, %v680_v63  ;;  %v1216_v14 = vld [vmem:[#allocation2 + $0x1bc] sm:$0xff]  ;;  %v889_v63 = vld [vmem:[#allocation2 + $0xe4] sm:$0xff] }
  0xb4   : > { %v544_v53 = vadd.f32 %v512_v49, %v408_v22  ;;  %v1168_v43 = vadd.f32 %v1136_v27, %v1064_v28  ;;  %v974_v32 = vadd.f32 %v942_v55, %v870_v20  ;;  %v767_v44 = vadd.f32 %v735_v62, %v663_v30  ;;  %v1097_v55 = vld [vmem:[#allocation2 + $0x10a] sm:$0xff] }
  0xb5   : > { %v943_v10 = vmul.f32 %v2907_v38, %v2849_v61  ;;  %v1048_v34 = vmul.f32 %v2914_v33, %v1008_v56  ;;  %v824_v40 = vmul.f32 %v2892_v37, %v784_v35  ;;  %v409_v17 = vmul.f32 %v2789_v29, %v2678_v57  ;;  %v785_v61 = vld [vmem:[#allocation2 + $0xe2] sm:$0xff]  ;;  %v994_v22 = vld [vmem:[#allocation2 + $0x110] sm:$0xff] }
  0xb6   : > { %v648_v48 = vadd.f32 %v616_v54, %v544_v53  ;;  %v1272_v36 = vadd.f32 %v1240_v1, %v1168_v43  ;;  %v1079_v47 = vadd.f32 %v1047_v6, %v974_v32  ;;  %v871_v19 = vadd.f32 %v839_v50, %v767_v44 }
  0xb7   : > { %v513_v3 = vmul.f32 %v2796_v0, %v2680_v13  ;;  %v1152_v21 = vmul.f32 %v2866_v5, %v1112_v23  ;;  %v928_v25 = vmul.f32 %v2907_v38, %v888_v4  ;;  %v617_v27 = vmul.f32 %v2808_v39, %v3388_v42  ;;  %v1202_v4 = vld [vmem:[#allocation2 + $0x114] sm:$0xff] }
  0xb8   : > { %v752_v59 = vadd.f32 %v720_v45, %v648_v48  ;;  %1851 = vmatmul.mubr.msk.f32.gmra.mrb[12].mxu0 %vm196_vm0, %v1272_v36  ;;  %v1183_v57 = vadd.f32 %v1151_v8, %v1079_v47  ;;  %v975_v1 = vadd.f32 %v943_v10, %v871_v19  ;;  %v721_v18 = vmul.f32 %v2883_v12, %v681_v15  ;;  %v1098_v45 = vld [vmem:[#allocation2 + $0x112] sm:$0xff]  ;;  %v1009_v47 = vld [vmem:[#allocation2 + $0x1c8] sm:$0xff] }
  0xb9   : > { %v545_v58 = vadd.f32 %v513_v3, %v409_v17  ;;  %v1256_v52 = vmul.f32 %v2873_v26, %v1216_v14  ;;  %v1033_v41 = vmul.f32 %v2914_v33, %v993_v24  ;;  %v825_v62 = vmul.f32 %v2892_v37, %v785_v61  ;;  %v3399_v48 = vld [vmem:[#allocation17_spill] sm:$0xff]  ;;  %v3400_v17 = vld [vmem:[#allocation19_spill] sm:$0xff]  ;;  %v3401_v14 = vld [vmem:[#allocation22_spill] sm:$0xff] }
  0xba   : > { %v856_v13 = vadd.f32 %v824_v40, %v752_v59  ;;  %v1287_v6 = vadd.f32 %v1255_v51, %v1183_v57  ;;  %v1080_v50 = vadd.f32 %v1048_v34, %v975_v1  ;;  %v424_v49 = vmul.f32 %v2789_v29, %v2712_v9  ;;  %v1113_v61 = vld [vmem:[#allocation2 + $0x1ca] sm:$0xff] }
  0xbb   : > { %v649_v42 = vadd.f32 %v617_v27, %v545_v58  ;;  %v1137_v20 = vmul.f32 %v2866_v5, %v1097_v55  ;;  %v528_v30 = vmul.f32 %v2796_v0, %v2714_v60  ;;  %v632_v56 = vmul.f32 %v2808_v39, %v2722_v7  ;;  %v1217_v57 = vld [vmem:[#allocation2 + $0x1cc] sm:$0xff] }
  0xbc   : > { %v960_v28 = vadd.f32 %v928_v25, %v856_v13  ;;  %1874 = vmatprep.mubr.msk.f32.mxu1 %vm196_vm0, %v1287_v6  ;;  %v1184_v54 = vadd.f32 %v1152_v21, %v1080_v50  ;;  %v1241_v35 = vmul.f32 %v2873_v26, %v1201_v31  ;;  %v929_v51 = vmul.f32 %v2907_v38, %v889_v63  ;;  %v3402_v25 = vld [vmem:[#allocation23_spill] sm:$0xff]  ;;  %v1010_v1 = vld [vmem:[#allocation2 + $0x1d0] sm:$0xff] }
  0xbd   : > { %v753_v8 = vadd.f32 %v721_v18, %v649_v42  ;;  %v1034_v9 = vmul.f32 %v2914_v33, %v994_v22  ;;  %v560_v43 = vadd.f32 %v528_v30, %v424_v49  ;;  %v736_v32 = vmul.f32 %v2883_v12, %v2945_v2  ;;  %v3403_v18 = vld [vmem:[#allocation25_spill] sm:$0xff] }
  0xbe   : > { %v1065_v53 = vadd.f32 %v1033_v41, %v960_v28  ;;  %v1288_v60 = vadd.f32 %v1256_v52, %v1184_v54  ;;  %v840_v7 = vmul.f32 %v2892_v37, %v2947_v46  ;;  %v425_v10 = vmul.f32 %v2789_v29, %v2724_v16  ;;  %v1114_v41 = vld [vmem:[#allocation2 + $0x1d2] sm:$0xff] }
  0xbf   : > { %v857_v44 = vadd.f32 %v825_v62, %v753_v8  ;;  %v664_v34 = vadd.f32 %v632_v56, %v560_v43  ;;  %v529_v40 = vmul.f32 %v2796_v0, %v3399_v48  ;;  %v633_v15 = vmul.f32 %v2808_v39, %v3400_v17  ;;  %v1218_v6 = vld [vmem:[#allocation2 + $0x1d4] sm:$0xff] }
  0xc0   : > { %v1169_v23 = vadd.f32 %v1137_v20, %v1065_v53  ;;  %1875 = vmatmul.mubr.msk.f32.gmra.mrb[12].mxu1 %vm196_vm0, %v1288_v60  ;;  %v1138_v36 = vmul.f32 %v2866_v5, %v1098_v45  ;;  %v944_v46 = vmul.f32 %v2907_v38, %v2956_v11  ;;  %v737_v24 = vmul.f32 %v2883_v12, %v3401_v14 }
  0xc1   : > { %v961_v2 = vadd.f32 %v929_v51, %v857_v44  ;;  %v768_v16 = vadd.f32 %v736_v32, %v664_v34  ;;  %v561_v29 = vadd.f32 %v529_v40, %v425_v10  ;;  %v1242_v0 = vmul.f32 %v2873_v26, %v1202_v4 }
  0xc2   : > { %v1273_v19 = vadd.f32 %v1241_v35, %v1169_v23  ;;  %v1049_v21 = vmul.f32 %v2914_v33, %v1009_v47  ;;  %v841_v11 = vmul.f32 %v2892_v37, %v3402_v25  ;;  %v1153_v58 = vmul.f32 %v2866_v5, %v1113_v61 }
  0xc3   : > { %v1066_v3 = vadd.f32 %v1034_v9, %v961_v2  ;;  %v872_v39 = vadd.f32 %v840_v7, %v768_v16  ;;  %v665_v59 = vadd.f32 %v633_v15, %v561_v29  ;;  %v945_v52 = vmul.f32 %v2907_v38, %v3403_v18 }
  0xc4   : > { %1853 = vmatprep.mubr.msk.f32.mxu0 %vm196_vm0, %v1273_v19  ;;  %v1257_v62 = vmul.f32 %v2873_v26, %v1217_v57  ;;  %v1050_v37 = vmul.f32 %v2914_v33, %v1010_v1  ;;  %v1154_v22 = vmul.f32 %v2866_v5, %v1114_v41  ;;  %v1258_v38 = vmul.f32 %v2873_v26, %v1218_v6  ;;  %v3092_v33 = vld [vmem:[%s3246_s2] ss:$0 sm:$0xff] }
  0xc5   : > { %v1170_v27 = vadd.f32 %v1138_v36, %v1066_v3  ;;  %v976_v55 = vadd.f32 %v944_v46, %v872_v39  ;;  %v769_v12 = vadd.f32 %v737_v24, %v665_v59 }
  0xc7   : > { %v1274_v13 = vadd.f32 %v1242_v0, %v1170_v27  ;;  %v1081_v31 = vadd.f32 %v1049_v21, %v976_v55  ;;  %v873_v63 = vadd.f32 %v841_v11, %v769_v12 }
  0xc9   : > { %1854 = vmatmul.mubr.msk.f32.gmra.mrb[14].mxu0 %vm196_vm0, %v1274_v13  ;;  %v1185_v50 = vadd.f32 %v1153_v58, %v1081_v31  ;;  %v977_v42 = vadd.f32 %v945_v52, %v873_v63 }
  0xcb   : > { %v1289_v49 = vadd.f32 %v1257_v62, %v1185_v50  ;;  %v1082_v28 = vadd.f32 %v1050_v37, %v977_v42 }
  0xcd   : > { %1877 = vmatprep.mubr.msk.f32.mxu1 %vm196_vm0, %v1289_v49  ;;  %v1186_v20 = vadd.f32 %v1154_v22, %v1082_v28 }
  0xcf   : > { %v1290_v30 = vadd.f32 %v1258_v38, %v1186_v20 }
  0xd1   : > { %1878 = vmatmul.mubr.msk.f32.gmra.mrb[14].mxu1 %vm196_vm0, %v1290_v30 }
 0x120   : > { %v1834_v56 = vpop.f32.mrb[0].mxu0 }
 0x121   : > { %v1468_v5 = vadd.f32 %v1834_v56, %v3092_v33  ;;  %v1462_v54 = vpop.f32.mrb[1].mxu0 }
 0x122   : > { %v1463_v26 = vadd.f32 %v3092_v33, %v1462_v54 }
 0x123   : > { %1623 = vst.msk [vmem:[%s3096_s23 + $0x8] sm:$0xff] %vm1621_vm2, %v1468_v5 }
 0x124   : > { %1622 = vst.msk [vmem:[%s3096_s23] sm:$0xff] %vm1621_vm2, %v1463_v26 }
 0x12a   : > { %v1858_v35 = vpop.f32.mrb[0].mxu1 }
 0x12b   : > { %v1548_v8 = vadd.f32 %v1858_v35, %v3092_v33  ;;  %v1542_v51 = vpop.f32.mrb[1].mxu1 }
 0x12c   : > { %v1543_v53 = vadd.f32 %v3092_v33, %v1542_v51 }
 0x12d   : > { %1639 = vst.msk [vmem:[%s3096_s23 + $0x88] sm:$0xff] %vm1621_vm2, %v1548_v8 }
 0x12e   : > { %1638 = vst.msk [vmem:[%s3096_s23 + $0x80] sm:$0xff] %vm1621_vm2, %v1543_v53 }
 0x12f   : > { %v1837_v9 = vpop.f32.mrb[2].mxu0 }
 0x130   : > { %v1478_v45 = vadd.f32 %v1837_v9, %v3092_v33  ;;  %v1472_v43 = vpop.f32.mrb[3].mxu0 }
 0x131   : > { %v1473_v32 = vadd.f32 %v3092_v33, %v1472_v43 }
 0x132   : > { %1625 = vst.msk [vmem:[%s3096_s23 + $0x18] sm:$0xff] %vm1621_vm2, %v1478_v45 }
 0x133   : > { %1624 = vst.msk [vmem:[%s3096_s23 + $0x10] sm:$0xff] %vm1621_vm2, %v1473_v32 }
 0x13a   : > { %v1861_v60 = vpop.f32.mrb[2].mxu1 }
 0x13b   : > { %v1558_v44 = vadd.f32 %v1861_v60, %v3092_v33  ;;  %v1552_v7 = vpop.f32.mrb[3].mxu1 }
 0x13c   : > { %v1553_v10 = vadd.f32 %v3092_v33, %v1552_v7 }
 0x13d   : > { %1641 = vst.msk [vmem:[%s3096_s23 + $0x98] sm:$0xff] %vm1621_vm2, %v1558_v44 }
 0x13e   : > { %1640 = vst.msk [vmem:[%s3096_s23 + $0x90] sm:$0xff] %vm1621_vm2, %v1553_v10 }
 0x145   : > { %v1840_v23 = vpop.f32.mrb[4].mxu0 }
 0x146   : > { %v1488_v4 = vadd.f32 %v1840_v23, %v3092_v33  ;;  %v1482_v34 = vpop.f32.mrb[5].mxu0 }
 0x147   : > { %v1483_v48 = vadd.f32 %v3092_v33, %v1482_v34 }
 0x148   : > { %1627 = vst.msk [vmem:[%s3096_s23 + $0x28] sm:$0xff] %vm1621_vm2, %v1488_v4 }
 0x149   : > { %1626 = vst.msk [vmem:[%s3096_s23 + $0x20] sm:$0xff] %vm1621_vm2, %v1483_v48 }
 0x14c   : > { %v1864_v40 = vpop.f32.mrb[4].mxu1 }
 0x14d   : > { %v1568_v17 = vadd.f32 %v1864_v40, %v3092_v33  ;;  %v1562_v15 = vpop.f32.mrb[5].mxu1 }
 0x14e   : > { %v1563_v2 = vadd.f32 %v3092_v33, %v1562_v15 }
 0x14f   : > { %1643 = vst.msk [vmem:[%s3096_s23 + $0xa8] sm:$0xff] %vm1621_vm2, %v1568_v17 }
 0x150   : > { %1642 = vst.msk [vmem:[%s3096_s23 + $0xa0] sm:$0xff] %vm1621_vm2, %v1563_v2 }
 0x155   : > { %v1843_v36 = vpop.f32.mrb[6].mxu0 }
 0x156   : > { %v1498_v46 = vadd.f32 %v1843_v36, %v3092_v33  ;;  %v1492_v47 = vpop.f32.mrb[7].mxu0 }
 0x157   : > { %v1493_v19 = vadd.f32 %v3092_v33, %v1492_v47 }
 0x158   : > { %1629 = vst.msk [vmem:[%s3096_s23 + $0x38] sm:$0xff] %vm1621_vm2, %v1498_v46 }
 0x159   : > { %1628 = vst.msk [vmem:[%s3096_s23 + $0x30] sm:$0xff] %vm1621_vm2, %v1493_v19 }
 0x15f   : > { %v1867_v16 = vpop.f32.mrb[6].mxu1 }
 0x160   : > { %v1578_v29 = vadd.f32 %v1867_v16, %v3092_v33  ;;  %v1572_v14 = vpop.f32.mrb[7].mxu1 }
 0x161   : > { %v1573_v24 = vadd.f32 %v3092_v33, %v1572_v14 }
 0x162   : > { %1645 = vst.msk [vmem:[%s3096_s23 + $0xb8] sm:$0xff] %vm1621_vm2, %v1578_v29 }
 0x163   : > { %1644 = vst.msk [vmem:[%s3096_s23 + $0xb0] sm:$0xff] %vm1621_vm2, %v1573_v24 }
 0x168   : > { %v1846_v3 = vpop.f32.mrb[8].mxu0 }
 0x169   : > { %v1508_v0 = vadd.f32 %v1846_v3, %v3092_v33  ;;  %v1502_v61 = vpop.f32.mrb[9].mxu0 }
 0x16a   : > { %v1503_v39 = vadd.f32 %v3092_v33, %v1502_v61 }
 0x16b   : > { %1631 = vst.msk [vmem:[%s3096_s23 + $0x48] sm:$0xff] %vm1621_vm2, %v1508_v0 }
 0x16c   : > { %1630 = vst.msk [vmem:[%s3096_s23 + $0x40] sm:$0xff] %vm1621_vm2, %v1503_v39 }
 0x170   : > { %v1870_v21 = vpop.f32.mrb[8].mxu1 }
 0x171   : > { %v1588_v59 = vadd.f32 %v1870_v21, %v3092_v33  ;;  %v1582_v25 = vpop.f32.mrb[9].mxu1 }
 0x172   : > { %v1583_v11 = vadd.f32 %v3092_v33, %v1582_v25 }
 0x173   : > { %1647 = vst.msk [vmem:[%s3096_s23 + $0xc8] sm:$0xff] %vm1621_vm2, %v1588_v59 }
 0x174   : > { %1646 = vst.msk [vmem:[%s3096_s23 + $0xc0] sm:$0xff] %vm1621_vm2, %v1583_v11 }
 0x179   : > { %v1849_v27 = vpop.f32.mrb[10].mxu0 }
 0x17a   : > { %v1518_v57 = vadd.f32 %v1849_v27, %v3092_v33  ;;  %v1512_v1 = vpop.f32.mrb[11].mxu0 }
 0x17b   : > { %v1513_v55 = vadd.f32 %v3092_v33, %v1512_v1 }
 0x17c   : > { %1633 = vst.msk [vmem:[%s3096_s23 + $0x58] sm:$0xff] %vm1621_vm2, %v1518_v57 }
 0x17d   : > { %1632 = vst.msk [vmem:[%s3096_s23 + $0x50] sm:$0xff] %vm1621_vm2, %v1513_v55 }
 0x182   : > { %v1873_v58 = vpop.f32.mrb[10].mxu1 }
 0x183   : > { %v1598_v12 = vadd.f32 %v1873_v58, %v3092_v33  ;;  %v1592_v18 = vpop.f32.mrb[11].mxu1 }
 0x184   : > { %v1593_v52 = vadd.f32 %v3092_v33, %v1592_v18 }
 0x185   : > { %1649 = vst.msk [vmem:[%s3096_s23 + $0xd8] sm:$0xff] %vm1621_vm2, %v1598_v12 }
 0x186   : > { %1648 = vst.msk [vmem:[%s3096_s23 + $0xd0] sm:$0xff] %vm1621_vm2, %v1593_v52 }
 0x18b   : > { %v1852_v13 = vpop.f32.mrb[12].mxu0 }
 0x18c   : > { %v1528_v41 = vadd.f32 %v1852_v13, %v3092_v33  ;;  %v1522_v31 = vpop.f32.mrb[13].mxu0 }
 0x18d   : > { %v1523_v62 = vadd.f32 %v3092_v33, %v1522_v31 }
 0x18e   : > { %1635 = vst.msk [vmem:[%s3096_s23 + $0x68] sm:$0xff] %vm1621_vm2, %v1528_v41 }
 0x18f   : > { %1634 = vst.msk [vmem:[%s3096_s23 + $0x60] sm:$0xff] %vm1621_vm2, %v1523_v62 }
 0x193   : > { %v1876_v63 = vpop.f32.mrb[12].mxu1 }
 0x194   : > { %v1608_v37 = vadd.f32 %v1876_v63, %v3092_v33  ;;  %v1602_v6 = vpop.f32.mrb[13].mxu1 }
 0x195   : > { %v1603_v50 = vadd.f32 %v3092_v33, %v1602_v6 }
 0x196   : > { %1651 = vst.msk [vmem:[%s3096_s23 + $0xe8] sm:$0xff] %vm1621_vm2, %v1608_v37 }
 0x197   : > { %1650 = vst.msk [vmem:[%s3096_s23 + $0xe0] sm:$0xff] %vm1621_vm2, %v1603_v50 }
 0x19c   : > { %v1855_v42 = vpop.f32.mrb[14].mxu0 }
 0x19d   : > { %v1538_v22 = vadd.f32 %v1855_v42, %v3092_v33  ;;  %v1532_v49 = vpop.f32.mrb[15].mxu0 }
 0x19e   : > { %v1533_v28 = vadd.f32 %v3092_v33, %v1532_v49 }
 0x19f   : > { %1637 = vst.msk [vmem:[%s3096_s23 + $0x78] sm:$0xff] %vm1621_vm2, %v1538_v22 }
 0x1a0   : > { %1636 = vst.msk [vmem:[%s3096_s23 + $0x70] sm:$0xff] %vm1621_vm2, %v1533_v28 }
 0x1a4   : > { %v1879_v38 = vpop.f32.mrb[14].mxu1 }
 0x1a5   : > { %v1618_v20 = vadd.f32 %v1879_v38, %v3092_v33  ;;  %v1612_v30 = vpop.f32.mrb[15].mxu1 }
 0x1a6   : > { %v1613_v56 = vadd.f32 %v3092_v33, %v1612_v30 }
 0x1a7   : > { %1653 = vst.msk [vmem:[%s3096_s23 + $0xf8] sm:$0xff] %vm1621_vm2, %v1618_v20 }
 0x1a8   : > { %1652 = vst.msk [vmem:[%s3096_s23 + $0xf0] sm:$0xff] %vm1621_vm2, %v1613_v56 }
 0x1a9   : > { %1950 = shalt.err (!%p1947_p3)
}
 0x1aa   : > { %s1951_s10 = scalar_lea.hbm %s3192_s5, 4096  ;;  %s1955_s13 = scalar_lea.hbm %s3248_s4, 8192 }
 0x1ab   : > { %p1952_p4 = scmp.ne.s32.totalorder %s3192_s5, %s1951_s10  ;;  %p1956_p9 = scmp.lt.u32.totalorder %s3192_s5, %s3248_s4 }
 0x1ac   : > { %p1957_p10 = scmp.lt.u32.totalorder %s1955_s13, %s1951_s10  ;;  %p1959_p12 = scmp.lt.u32.totalorder %s1951_s10, %s3192_s5 }
 0x1ad   : > { %p1953_p7 = pnand %p1952_p4, %p2068_p5 }
 0x1ae   : > { %p1958_p11 = por %p1957_p10, %p1956_p9 }
 0x1af   : > { %p1954_p8 = pneg %p1953_p7 }
 0x1b0   : > { %p1960_p13 = por %p1959_p12, %p1958_p11 }
 0x1b2   : > { %p1961_p0 = pnand %p1960_p13, %p1954_p8 }
 0x1b4   : > { %1964 = shalt.err (!%p1961_p0)
}
 0x1b5   : > { %s2003_s22 = smov 128   ;;  %s2004_s23 = smov 8  }
 0x1b6   : > { %1886 = dma.vmem_to_hbm [thread:$0]  (%p2068_p5), %s3194_s28, 4096, %s3192_s5, %s3203_s19, %s2003_s22, %s2003_s22, %s2004_s23  }
 0x1b7 PF: > { %p1892_p1 = scmp.ge.s32.totalorder %s1999_s18, 2  ;;  %s1683_s27 = sand.u32 1, %s1987_s15  }
 0x1b8   : > { %s1684_s29 = scalar_lea.sflag [#allocation5], %s1683_s27 }
 0x1b9   : > { %p1889_p2 = pnand %p1892_p1, %p2072_p6 }
 0x1bb   : > { %1982 = dma.done.wait (!%p1889_p2), %s1684_s29, 4096  }
 0x1bc   : > { %1984 = vsyncadd (!%p1889_p2), %s1684_s29, 4294963200  ;;  %p14_p3 = scmp.ge.s32.totalorder %s2055_s21, 4   ;;  %s3404_s15 = smov %s1991_s16 }
 0x1bd   : > { %s3405_s16 = smov %s1995_s17  ;;  %s3406_s17 = smov %s2066_s24 }
 0x1be   : > { %s3407_s18 = smov %s2055_s21  ;;  %16 = sbr.rel (!%p14_p3) target bundleno = 3 (0x3), region = 81 }
 0x1c5   :  { %1689 = vsyncpa [#allocation5], 1 }
 0x1c6   :  { %1691 = vsyncpa [#allocation5 + $0x1], 1 }

</bundles_post_ra>
